<compile_context>
chip_gen: v7x
topology: tpu7x:2x2x1
jax: 0.10.0
libtpu: 0.0.40
codegen_flags: <defaults>
</compile_context>

<pallas_src>
import functools

import jax
import jax.numpy as jnp
from jax.experimental import pallas as pl
from jax.experimental.pallas import tpu as pltpu

EPS_LN = 1e-5  # nn.LayerNorm default eps


def _round_up(x, m):
    return (x + m - 1) // m * m


def _ln_relu_seg(y, fold, d):
    """LayerNorm (gamma=1, beta=0, eps=1e-5) + ReLU applied independently to each of the
    `fold` contiguous `d`-lane segments of a folded row. Two-pass variance, all f32.
    The centering / squaring / normalize / ReLU work runs lane-dense on the full folded
    row; only the per-segment reductions (XLU) and the stat re-broadcast touch sub-128-lane
    slices."""
    if fold == 1:
        m = jnp.mean(y, axis=-1, keepdims=True)
        c = y - m
        v = jnp.mean(c * c, axis=-1, keepdims=True)
        return jnp.maximum(c * jax.lax.rsqrt(v + EPS_LN), 0.0)

    tn = y.shape[0]
    means = [jnp.mean(y[:, f * d:(f + 1) * d], axis=-1, keepdims=True)
             for f in range(fold)]
    mean_b = jnp.concatenate([jnp.broadcast_to(m, (tn, d)) for m in means], axis=-1)
    c = y - mean_b                        # dense VPU
    c2 = c * c                            # dense VPU
    vars_ = [jnp.mean(c2[:, f * d:(f + 1) * d], axis=-1, keepdims=True)
             for f in range(fold)]
    rstd_b = jnp.concatenate(
        [jnp.broadcast_to(jax.lax.rsqrt(v + EPS_LN), (tn, d)) for v in vars_], axis=-1)
    return jnp.maximum(c * rstd_b, 0.0)   # dense VPU


def _edge_mlp_kernel(z_ref, w1_ref, b1_ref, w2_ref, b2_ref, o_ref, *, fold, d1, d2):
    """One row-tile of folded edges.

    z_ref:  (TN, D0*fold) bf16   folded edge operand (fold edges per row)
    w1_ref: (D0*fold, D1*fold) bf16 block-diagonal layer-1 weight
    b1_ref: (1, D1*fold) f32
    w2_ref: (D1*fold, D2*fold) bf16 block-diagonal layer-2 weight
    b2_ref: (1, D2*fold) f32
    o_ref:  (TN, D2*fold) bf16   folded output (already lane-dense)
    """
    # Layer 1: single bf16 MXU matmul (f32 accumulation), fused "concat @ W1 + b1".
    y1 = jnp.dot(z_ref[...], w1_ref[...],
                 preferred_element_type=jnp.float32) + b1_ref[...]
    h1 = _ln_relu_seg(y1, fold, d1)

    # Layer 2: bf16 matmul (f32 acc) -- avoids emulated f32xf32 on the MXU.
    y2 = jnp.dot(h1.astype(jnp.bfloat16), w2_ref[...],
                 preferred_element_type=jnp.float32) + b2_ref[...]
    h2 = _ln_relu_seg(y2, fold, d2)

    # Output already lands in the folded (TN, D2*fold) layout: plain dense store.
    o_ref[...] = h2.astype(o_ref.dtype)


def edge_updater_forward(x, edge_index, edge_attr, w1, b1, w2, b2, *,
                         edge_mode="NodeConcat", tile_rows=4096, fold=None,
                         io_dtype=jnp.bfloat16):
    """EdgeUpdater forward.

    x:          (num_nodes, Dn) node features
    edge_index: (2, E) int32
    edge_attr:  (E, De) edge features
    w1:         (D0, D1) pre-transposed first Linear weight (D0 = 2*Dn+De or Dn+De)
    b1:         (D1,)    first Linear bias
    w2:         (D1, D2) pre-transposed second Linear weight
    b2:         (D2,)    second Linear bias
    fold:       edges packed per vreg row (4 for v6e/v7x, 2 for v5e, None = auto).
    """
    Dn = x.shape[-1]
    De = edge_attr.shape[-1]
    E = edge_attr.shape[0]
    D1 = w1.shape[1]
    D2 = w2.shape[1]

    # --- gather + edge-mode combine + concat (stays in XLA, fuses into one pass) --------
    xs = x[edge_index[0]]
    xt = x[edge_index[1]]
    if edge_mode == "NodeConcat":
        assert w1.shape[0] == 2 * Dn + De
        z = jnp.concatenate([xs, xt, edge_attr], axis=-1)
    elif edge_mode == "NodeDiff":
        assert w1.shape[0] == Dn + De
        z = jnp.concatenate([xs - xt, edge_attr], axis=-1)
    else:
        raise ValueError(f"unknown edge_mode {edge_mode}")
    D0 = z.shape[-1]
    z = z.astype(io_dtype)
    # TODO(synk): the data-dependent row gather x[edge_index] (and this concat) stays in
    # XLA, so gathered node bytes cross HBM one extra time; an in-kernel gather
    # (VMEM-resident node table + jnp.take) conflicts with the lane-dense fold below and
    # only pays off for small node tables.

    # --- fold selection: pack `fold` edges into each 128-lane row -----------------------
    if fold is None:
        fold = 1
        for f in (4, 2):   # prefer 4 (fills v6e/v7x 256-wide MXU); pass fold=2 on v5e
            if (D0 * f) % 128 == 0 and (D2 * f) % 128 == 0:
                fold = f
                break

    # pad E only to a multiple of `fold` (< fold rows; fuses with the concat/cast)
    e_pad = _round_up(E, fold)
    if e_pad != E:
        z = jnp.pad(z, ((0, e_pad - E), (0, 0)))
    rows = e_pad // fold
    zf = z.reshape(rows, D0 * fold)      # pure row-major view: `fold` edges per row

    # --- block-diagonal weights: every load / matmul / LN / store is lane-dense ---------
    eye = jnp.eye(fold, dtype=jnp.float32)
    w1_bd = jnp.kron(eye, jnp.asarray(w1, jnp.float32)).astype(io_dtype)
    w2_bd = jnp.kron(eye, jnp.asarray(w2, jnp.float32)).astype(io_dtype)
    b1_bd = jnp.tile(jnp.asarray(b1, jnp.float32).reshape(1, D1), (1, fold))
    b2_bd = jnp.tile(jnp.asarray(b2, jnp.float32).reshape(1, D2), (1, fold))

    # --- row tiling over (folded) edges --------------------------------------------------
    tnf = max(8, tile_rows // fold)
    if rows >= 16:
        # keep >= 2 grid steps so the "parallel" edge axis can shard over v7x's 2 TCs
        tnf = min(tnf, _round_up(pl.cdiv(rows, 2), 8))
    tnf = _round_up(min(tnf, rows), 8)
    grid = (pl.cdiv(rows, tnf),)

    kernel = functools.partial(_edge_mlp_kernel, fold=fold, d1=D1, d2=D2)
    out_f = pl.pallas_call(
        kernel,
        out_shape=jax.ShapeDtypeStruct((rows, D2 * fold), io_dtype),
        grid=grid,
        in_specs=[
            # NOTE: if the profile shows exposed DMA waits, add
            # pipeline_mode=pl.Buffered(3) to this edge-operand spec.
            pl.BlockSpec((tnf, D0 * fold), lambda i: (i, 0)),
            # constant index_map -> weights/biases stay VMEM-resident across grid steps
            pl.BlockSpec(w1_bd.shape, lambda i: (0, 0)),
            pl.BlockSpec(b1_bd.shape, lambda i: (0, 0)),
            pl.BlockSpec(w2_bd.shape, lambda i: (0, 0)),
            pl.BlockSpec(b2_bd.shape, lambda i: (0, 0)),
        ],
        out_specs=pl.BlockSpec((tnf, D2 * fold), lambda i: (i, 0)),
        compiler_params=pltpu.CompilerParams(
            dimension_semantics=("parallel",),
        ),
    )(zf, w1_bd, b1_bd, w2_bd, b2_bd)

    # undo the fold (pure metadata reshape) and drop the <fold padded rows
    return out_f.reshape(e_pad, D2)[:E]


# ----------------------------- test harness ------------------------------------------

def _kaiming_normal(key, out_dim, in_dim, a=0.0):
    # torch.nn.init.kaiming_normal_ default: mode='fan_in', nonlinearity='leaky_relu'
    gain = (2.0 / (1.0 + a * a)) ** 0.5
    std = gain / (in_dim ** 0.5)
    return jax.random.normal(key, (out_dim, in_dim), dtype=jnp.float32) * std


def _reference(x, edge_index, edge_attr, w1, b1, w2, b2, edge_mode):
    """Pure-JAX reference with the kernel's precision policy (bf16 matmul operands,
    f32 accumulation, f32 two-pass LayerNorm)."""
    xs, xt = x[edge_index[0]], x[edge_index[1]]
    if edge_mode == "NodeConcat":
        z = jnp.concatenate([xs, xt, edge_attr], axis=-1)
    else:
        z = jnp.concatenate([xs - xt, edge_attr], axis=-1)

    def layer(h, w, b):
        y = jnp.dot(h.astype(jnp.bfloat16), w.astype(jnp.bfloat16),
                    preferred_element_type=jnp.float32) + b.reshape(1, -1)
        m = jnp.mean(y, axis=-1, keepdims=True)
        c = y - m
        v = jnp.mean(c * c, axis=-1, keepdims=True)
        return jnp.maximum(c * jax.lax.rsqrt(v + EPS_LN), 0.0)

    return layer(layer(z, w1, b1), w2, b2)


if __name__ == "__main__":
    key = jax.random.PRNGKey(0)
    kx, ke, ka, kw1c, kw1d, kw2 = jax.random.split(key, 6)

    num_nodes, Dn, De, E = 64, 12, 8, 256
    D1, D2 = 64, 32                       # dims_list = [D0, 64, 32]

    x = jax.random.normal(kx, (num_nodes, Dn), dtype=jnp.float32).astype(jnp.bfloat16)
    edge_index = jax.random.randint(ke, (2, E), 0, num_nodes, dtype=jnp.int32)
    edge_attr = jax.random.normal(ka, (E, De), dtype=jnp.float32).astype(jnp.bfloat16)

    # nn.Linear weights (out, in) init kaiming_normal_(a=0), bias = -0.5; pre-transposed.
    b1 = jnp.full((D1,), -0.5, dtype=jnp.float32)
    b2 = jnp.full((D2,), -0.5, dtype=jnp.float32)
    w2 = _kaiming_normal(kw2, D2, D1).T

    for mode, kw in (("NodeConcat", kw1c), ("NodeDiff", kw1d)):
        D0 = 2 * Dn + De if mode == "NodeConcat" else Dn + De
        w1 = _kaiming_normal(kw, D1, D0).T
        out = edge_updater_forward(x, edge_index, edge_attr, w1, b1, w2, b2,
                                   edge_mode=mode)
        out = jax.block_until_ready(out)

        ref = _reference(x, edge_index, edge_attr, w1, b1, w2, b2, mode)
        assert out.shape == (E, D2), f"bad shape {out.shape} ({mode})"
        assert out.dtype == jnp.bfloat16
        assert jnp.allclose(out.astype(jnp.float32), ref, atol=3e-2, rtol=3e-2), \
            f"mismatch vs JAX reference ({mode})"

    print("KERNEL_OK")
</pallas_src>

<mosaic_0001>
module attributes {stable_mosaic.version = 11 : i64} {
  func.func @_edge_mlp_kernel(%arg0: i32, %arg1: memref<32x128xbf16, #tpu.memory_space<vmem>>, %arg2: memref<128x256xbf16, #tpu.memory_space<vmem>>, %arg3: memref<1x256xf32, #tpu.memory_space<vmem>>, %arg4: memref<256x128xbf16, #tpu.memory_space<vmem>>, %arg5: memref<1x128xf32, #tpu.memory_space<vmem>>, %arg6: memref<32x128xbf16, #tpu.memory_space<vmem>>) attributes {dimension_semantics = [#tpu.dimension_semantics<parallel>], iteration_bounds = array<i64: 2>, scalar_prefetch = 0 : i64, scratch_operands = 0 : i64, tpu.core_type = #tpu.core_type<tc>, window_params = [{transform_indices = @transform_0, window_bounds = array<i64: 32, 128>}, {pipeline_mode = #tpu.pipeline_mode<synchronous>, transform_indices = @transform_1, window_bounds = array<i64: 128, 256>}, {pipeline_mode = #tpu.pipeline_mode<synchronous>, transform_indices = @transform_2, window_bounds = array<i64: 1, 256>}, {pipeline_mode = #tpu.pipeline_mode<synchronous>, transform_indices = @transform_3, window_bounds = array<i64: 256, 128>}, {pipeline_mode = #tpu.pipeline_mode<synchronous>, transform_indices = @transform_4, window_bounds = array<i64: 1, 128>}, {transform_indices = @transform_5, window_bounds = array<i64: 32, 128>}]} {
    %c0 = arith.constant 0 : index
    %c0_0 = arith.constant 0 : index
    %0 = vector.load %arg1[%c0, %c0_0] : memref<32x128xbf16, #tpu.memory_space<vmem>>, vector<32x128xbf16>
    %c0_1 = arith.constant 0 : index
    %c0_2 = arith.constant 0 : index
    %1 = vector.load %arg2[%c0_1, %c0_2] : memref<128x256xbf16, #tpu.memory_space<vmem>>, vector<128x256xbf16>
    %cst = arith.constant dense<0.000000e+00> : vector<32x256xf32>
    %2 = tpu.matmul %0, %1, %cst {dimension_numbers = #tpu.dot_dimension_numbers<[1], [0], [0], [1], [0, 0, 1, 1], [], []>} : vector<32x128xbf16>, vector<128x256xbf16>, vector<32x256xf32> -> vector<32x256xf32>
    %c0_3 = arith.constant 0 : index
    %c0_4 = arith.constant 0 : index
    %3 = vector.load %arg3[%c0_3, %c0_4] : memref<1x256xf32, #tpu.memory_space<vmem>>, vector<1x256xf32>
    %4 = vector.broadcast %3 : vector<1x256xf32> to vector<32x256xf32>
    %5 = arith.addf %2, %4 : vector<32x256xf32>
    %6 = vector.extract_strided_slice %5 {offsets = [0, 0], sizes = [32, 64], strides = [1, 1]} : vector<32x256xf32> to vector<32x64xf32>
    %cst_5 = arith.constant dense<0.000000e+00> : vector<32xf32>
    %7 = vector.multi_reduction <add>, %6, %cst_5 [1] : vector<32x64xf32> to vector<32xf32>
    %8 = vector.shape_cast %7 : vector<32xf32> to vector<32x1xf32>
    %cst_6 = arith.constant 6.400000e+01 : f32
    %9 = vector.broadcast %cst_6 : f32 to vector<32x1xf32>
    %10 = arith.divf %8, %9 : vector<32x1xf32>
    %11 = vector.extract_strided_slice %5 {offsets = [0, 64], sizes = [32, 64], strides = [1, 1]} : vector<32x256xf32> to vector<32x64xf32>
    %cst_7 = arith.constant dense<0.000000e+00> : vector<32xf32>
    %12 = vector.multi_reduction <add>, %11, %cst_7 [1] : vector<32x64xf32> to vector<32xf32>
    %13 = vector.shape_cast %12 : vector<32xf32> to vector<32x1xf32>
    %cst_8 = arith.constant 6.400000e+01 : f32
    %14 = vector.broadcast %cst_8 : f32 to vector<32x1xf32>
    %15 = arith.divf %13, %14 : vector<32x1xf32>
    %16 = vector.extract_strided_slice %5 {offsets = [0, 128], sizes = [32, 64], strides = [1, 1]} : vector<32x256xf32> to vector<32x64xf32>
    %cst_9 = arith.constant dense<0.000000e+00> : vector<32xf32>
    %17 = vector.multi_reduction <add>, %16, %cst_9 [1] : vector<32x64xf32> to vector<32xf32>
    %18 = vector.shape_cast %17 : vector<32xf32> to vector<32x1xf32>
    %cst_10 = arith.constant 6.400000e+01 : f32
    %19 = vector.broadcast %cst_10 : f32 to vector<32x1xf32>
    %20 = arith.divf %18, %19 : vector<32x1xf32>
    %21 = vector.extract_strided_slice %5 {offsets = [0, 192], sizes = [32, 64], strides = [1, 1]} : vector<32x256xf32> to vector<32x64xf32>
    %cst_11 = arith.constant dense<0.000000e+00> : vector<32xf32>
    %22 = vector.multi_reduction <add>, %21, %cst_11 [1] : vector<32x64xf32> to vector<32xf32>
    %23 = vector.shape_cast %22 : vector<32xf32> to vector<32x1xf32>
    %cst_12 = arith.constant 6.400000e+01 : f32
    %24 = vector.broadcast %cst_12 : f32 to vector<32x1xf32>
    %25 = arith.divf %23, %24 : vector<32x1xf32>
    %26 = vector.shape_cast %10 : vector<32x1xf32> to vector<32x1xf32>
    %27 = vector.broadcast %26 : vector<32x1xf32> to vector<32x64xf32>
    %28 = vector.shape_cast %15 : vector<32x1xf32> to vector<32x1xf32>
    %29 = vector.broadcast %28 : vector<32x1xf32> to vector<32x64xf32>
    %30 = vector.shape_cast %20 : vector<32x1xf32> to vector<32x1xf32>
    %31 = vector.broadcast %30 : vector<32x1xf32> to vector<32x64xf32>
    %32 = vector.shape_cast %25 : vector<32x1xf32> to vector<32x1xf32>
    %33 = vector.broadcast %32 : vector<32x1xf32> to vector<32x64xf32>
    %34 = tpu.concatenate %27, %29, %31, %33 in 1 : vector<32x64xf32>, vector<32x64xf32>, vector<32x64xf32>, vector<32x64xf32> -> vector<32x256xf32>
    %35 = arith.subf %5, %34 : vector<32x256xf32>
    %36 = arith.mulf %35, %35 : vector<32x256xf32>
    %37 = vector.extract_strided_slice %36 {offsets = [0, 0], sizes = [32, 64], strides = [1, 1]} : vector<32x256xf32> to vector<32x64xf32>
    %cst_13 = arith.constant dense<0.000000e+00> : vector<32xf32>
    %38 = vector.multi_reduction <add>, %37, %cst_13 [1] : vector<32x64xf32> to vector<32xf32>
    %39 = vector.shape_cast %38 : vector<32xf32> to vector<32x1xf32>
    %cst_14 = arith.constant 6.400000e+01 : f32
    %40 = vector.broadcast %cst_14 : f32 to vector<32x1xf32>
    %41 = arith.divf %39, %40 : vector<32x1xf32>
    %42 = vector.extract_strided_slice %36 {offsets = [0, 64], sizes = [32, 64], strides = [1, 1]} : vector<32x256xf32> to vector<32x64xf32>
    %cst_15 = arith.constant dense<0.000000e+00> : vector<32xf32>
    %43 = vector.multi_reduction <add>, %42, %cst_15 [1] : vector<32x64xf32> to vector<32xf32>
    %44 = vector.shape_cast %43 : vector<32xf32> to vector<32x1xf32>
    %cst_16 = arith.constant 6.400000e+01 : f32
    %45 = vector.broadcast %cst_16 : f32 to vector<32x1xf32>
    %46 = arith.divf %44, %45 : vector<32x1xf32>
    %47 = vector.extract_strided_slice %36 {offsets = [0, 128], sizes = [32, 64], strides = [1, 1]} : vector<32x256xf32> to vector<32x64xf32>
    %cst_17 = arith.constant dense<0.000000e+00> : vector<32xf32>
    %48 = vector.multi_reduction <add>, %47, %cst_17 [1] : vector<32x64xf32> to vector<32xf32>
    %49 = vector.shape_cast %48 : vector<32xf32> to vector<32x1xf32>
    %cst_18 = arith.constant 6.400000e+01 : f32
    %50 = vector.broadcast %cst_18 : f32 to vector<32x1xf32>
    %51 = arith.divf %49, %50 : vector<32x1xf32>
    %52 = vector.extract_strided_slice %36 {offsets = [0, 192], sizes = [32, 64], strides = [1, 1]} : vector<32x256xf32> to vector<32x64xf32>
    %cst_19 = arith.constant dense<0.000000e+00> : vector<32xf32>
    %53 = vector.multi_reduction <add>, %52, %cst_19 [1] : vector<32x64xf32> to vector<32xf32>
    %54 = vector.shape_cast %53 : vector<32xf32> to vector<32x1xf32>
    %cst_20 = arith.constant 6.400000e+01 : f32
    %55 = vector.broadcast %cst_20 : f32 to vector<32x1xf32>
    %56 = arith.divf %54, %55 : vector<32x1xf32>
    %cst_21 = arith.constant 9.99999974E-6 : f32
    %57 = vector.broadcast %cst_21 : f32 to vector<32x1xf32>
    %58 = arith.addf %41, %57 : vector<32x1xf32>
    %59 = math.rsqrt %58 : vector<32x1xf32>
    %60 = vector.shape_cast %59 : vector<32x1xf32> to vector<32x1xf32>
    %61 = vector.broadcast %60 : vector<32x1xf32> to vector<32x64xf32>
    %cst_22 = arith.constant 9.99999974E-6 : f32
    %62 = vector.broadcast %cst_22 : f32 to vector<32x1xf32>
    %63 = arith.addf %46, %62 : vector<32x1xf32>
    %64 = math.rsqrt %63 : vector<32x1xf32>
    %65 = vector.shape_cast %64 : vector<32x1xf32> to vector<32x1xf32>
    %66 = vector.broadcast %65 : vector<32x1xf32> to vector<32x64xf32>
    %cst_23 = arith.constant 9.99999974E-6 : f32
    %67 = vector.broadcast %cst_23 : f32 to vector<32x1xf32>
    %68 = arith.addf %51, %67 : vector<32x1xf32>
    %69 = math.rsqrt %68 : vector<32x1xf32>
    %70 = vector.shape_cast %69 : vector<32x1xf32> to vector<32x1xf32>
    %71 = vector.broadcast %70 : vector<32x1xf32> to vector<32x64xf32>
    %cst_24 = arith.constant 9.99999974E-6 : f32
    %72 = vector.broadcast %cst_24 : f32 to vector<32x1xf32>
    %73 = arith.addf %56, %72 : vector<32x1xf32>
    %74 = math.rsqrt %73 : vector<32x1xf32>
    %75 = vector.shape_cast %74 : vector<32x1xf32> to vector<32x1xf32>
    %76 = vector.broadcast %75 : vector<32x1xf32> to vector<32x64xf32>
    %77 = tpu.concatenate %61, %66, %71, %76 in 1 : vector<32x64xf32>, vector<32x64xf32>, vector<32x64xf32>, vector<32x64xf32> -> vector<32x256xf32>
    %78 = arith.mulf %35, %77 : vector<32x256xf32>
    %cst_25 = arith.constant 0.000000e+00 : f32
    %79 = vector.broadcast %cst_25 : f32 to vector<32x256xf32>
    %80 = arith.maximumf %78, %79 : vector<32x256xf32>
    %81 = arith.truncf %80 : vector<32x256xf32> to vector<32x256xbf16>
    %c0_26 = arith.constant 0 : index
    %c0_27 = arith.constant 0 : index
    %82 = vector.load %arg4[%c0_26, %c0_27] : memref<256x128xbf16, #tpu.memory_space<vmem>>, vector<256x128xbf16>
    %cst_28 = arith.constant dense<0.000000e+00> : vector<32x128xf32>
    %83 = tpu.matmul %81, %82, %cst_28 {dimension_numbers = #tpu.dot_dimension_numbers<[1], [0], [0], [1], [0, 0, 1, 1], [], []>} : vector<32x256xbf16>, vector<256x128xbf16>, vector<32x128xf32> -> vector<32x128xf32>
    %c0_29 = arith.constant 0 : index
    %c0_30 = arith.constant 0 : index
    %84 = vector.load %arg5[%c0_29, %c0_30] : memref<1x128xf32, #tpu.memory_space<vmem>>, vector<1x128xf32>
    %85 = vector.broadcast %84 : vector<1x128xf32> to vector<32x128xf32>
    %86 = arith.addf %83, %85 : vector<32x128xf32>
    %87 = vector.extract_strided_slice %86 {offsets = [0, 0], sizes = [32, 32], strides = [1, 1]} : vector<32x128xf32> to vector<32x32xf32>
    %cst_31 = arith.constant dense<0.000000e+00> : vector<32xf32>
    %88 = vector.multi_reduction <add>, %87, %cst_31 [1] : vector<32x32xf32> to vector<32xf32>
    %89 = vector.shape_cast %88 : vector<32xf32> to vector<32x1xf32>
    %cst_32 = arith.constant 3.200000e+01 : f32
    %90 = vector.broadcast %cst_32 : f32 to vector<32x1xf32>
    %91 = arith.divf %89, %90 : vector<32x1xf32>
    %92 = vector.extract_strided_slice %86 {offsets = [0, 32], sizes = [32, 32], strides = [1, 1]} : vector<32x128xf32> to vector<32x32xf32>
    %cst_33 = arith.constant dense<0.000000e+00> : vector<32xf32>
    %93 = vector.multi_reduction <add>, %92, %cst_33 [1] : vector<32x32xf32> to vector<32xf32>
    %94 = vector.shape_cast %93 : vector<32xf32> to vector<32x1xf32>
    %cst_34 = arith.constant 3.200000e+01 : f32
    %95 = vector.broadcast %cst_34 : f32 to vector<32x1xf32>
    %96 = arith.divf %94, %95 : vector<32x1xf32>
    %97 = vector.extract_strided_slice %86 {offsets = [0, 64], sizes = [32, 32], strides = [1, 1]} : vector<32x128xf32> to vector<32x32xf32>
    %cst_35 = arith.constant dense<0.000000e+00> : vector<32xf32>
    %98 = vector.multi_reduction <add>, %97, %cst_35 [1] : vector<32x32xf32> to vector<32xf32>
    %99 = vector.shape_cast %98 : vector<32xf32> to vector<32x1xf32>
    %cst_36 = arith.constant 3.200000e+01 : f32
    %100 = vector.broadcast %cst_36 : f32 to vector<32x1xf32>
    %101 = arith.divf %99, %100 : vector<32x1xf32>
    %102 = vector.extract_strided_slice %86 {offsets = [0, 96], sizes = [32, 32], strides = [1, 1]} : vector<32x128xf32> to vector<32x32xf32>
    %cst_37 = arith.constant dense<0.000000e+00> : vector<32xf32>
    %103 = vector.multi_reduction <add>, %102, %cst_37 [1] : vector<32x32xf32> to vector<32xf32>
    %104 = vector.shape_cast %103 : vector<32xf32> to vector<32x1xf32>
    %cst_38 = arith.constant 3.200000e+01 : f32
    %105 = vector.broadcast %cst_38 : f32 to vector<32x1xf32>
    %106 = arith.divf %104, %105 : vector<32x1xf32>
    %107 = vector.shape_cast %91 : vector<32x1xf32> to vector<32x1xf32>
    %108 = vector.broadcast %107 : vector<32x1xf32> to vector<32x32xf32>
    %109 = vector.shape_cast %96 : vector<32x1xf32> to vector<32x1xf32>
    %110 = vector.broadcast %109 : vector<32x1xf32> to vector<32x32xf32>
    %111 = vector.shape_cast %101 : vector<32x1xf32> to vector<32x1xf32>
    %112 = vector.broadcast %111 : vector<32x1xf32> to vector<32x32xf32>
    %113 = vector.shape_cast %106 : vector<32x1xf32> to vector<32x1xf32>
    %114 = vector.broadcast %113 : vector<32x1xf32> to vector<32x32xf32>
    %115 = tpu.concatenate %108, %110, %112, %114 in 1 : vector<32x32xf32>, vector<32x32xf32>, vector<32x32xf32>, vector<32x32xf32> -> vector<32x128xf32>
    %116 = arith.subf %86, %115 : vector<32x128xf32>
    %117 = arith.mulf %116, %116 : vector<32x128xf32>
    %118 = vector.extract_strided_slice %117 {offsets = [0, 0], sizes = [32, 32], strides = [1, 1]} : vector<32x128xf32> to vector<32x32xf32>
    %cst_39 = arith.constant dense<0.000000e+00> : vector<32xf32>
    %119 = vector.multi_reduction <add>, %118, %cst_39 [1] : vector<32x32xf32> to vector<32xf32>
    %120 = vector.shape_cast %119 : vector<32xf32> to vector<32x1xf32>
    %cst_40 = arith.constant 3.200000e+01 : f32
    %121 = vector.broadcast %cst_40 : f32 to vector<32x1xf32>
    %122 = arith.divf %120, %121 : vector<32x1xf32>
    %123 = vector.extract_strided_slice %117 {offsets = [0, 32], sizes = [32, 32], strides = [1, 1]} : vector<32x128xf32> to vector<32x32xf32>
    %cst_41 = arith.constant dense<0.000000e+00> : vector<32xf32>
    %124 = vector.multi_reduction <add>, %123, %cst_41 [1] : vector<32x32xf32> to vector<32xf32>
    %125 = vector.shape_cast %124 : vector<32xf32> to vector<32x1xf32>
    %cst_42 = arith.constant 3.200000e+01 : f32
    %126 = vector.broadcast %cst_42 : f32 to vector<32x1xf32>
    %127 = arith.divf %125, %126 : vector<32x1xf32>
    %128 = vector.extract_strided_slice %117 {offsets = [0, 64], sizes = [32, 32], strides = [1, 1]} : vector<32x128xf32> to vector<32x32xf32>
    %cst_43 = arith.constant dense<0.000000e+00> : vector<32xf32>
    %129 = vector.multi_reduction <add>, %128, %cst_43 [1] : vector<32x32xf32> to vector<32xf32>
    %130 = vector.shape_cast %129 : vector<32xf32> to vector<32x1xf32>
    %cst_44 = arith.constant 3.200000e+01 : f32
    %131 = vector.broadcast %cst_44 : f32 to vector<32x1xf32>
    %132 = arith.divf %130, %131 : vector<32x1xf32>
    %133 = vector.extract_strided_slice %117 {offsets = [0, 96], sizes = [32, 32], strides = [1, 1]} : vector<32x128xf32> to vector<32x32xf32>
    %cst_45 = arith.constant dense<0.000000e+00> : vector<32xf32>
    %134 = vector.multi_reduction <add>, %133, %cst_45 [1] : vector<32x32xf32> to vector<32xf32>
    %135 = vector.shape_cast %134 : vector<32xf32> to vector<32x1xf32>
    %cst_46 = arith.constant 3.200000e+01 : f32
    %136 = vector.broadcast %cst_46 : f32 to vector<32x1xf32>
    %137 = arith.divf %135, %136 : vector<32x1xf32>
    %cst_47 = arith.constant 9.99999974E-6 : f32
    %138 = vector.broadcast %cst_47 : f32 to vector<32x1xf32>
    %139 = arith.addf %122, %138 : vector<32x1xf32>
    %140 = math.rsqrt %139 : vector<32x1xf32>
    %141 = vector.shape_cast %140 : vector<32x1xf32> to vector<32x1xf32>
    %142 = vector.broadcast %141 : vector<32x1xf32> to vector<32x32xf32>
    %cst_48 = arith.constant 9.99999974E-6 : f32
    %143 = vector.broadcast %cst_48 : f32 to vector<32x1xf32>
    %144 = arith.addf %127, %143 : vector<32x1xf32>
    %145 = math.rsqrt %144 : vector<32x1xf32>
    %146 = vector.shape_cast %145 : vector<32x1xf32> to vector<32x1xf32>
    %147 = vector.broadcast %146 : vector<32x1xf32> to vector<32x32xf32>
    %cst_49 = arith.constant 9.99999974E-6 : f32
    %148 = vector.broadcast %cst_49 : f32 to vector<32x1xf32>
    %149 = arith.addf %132, %148 : vector<32x1xf32>
    %150 = math.rsqrt %149 : vector<32x1xf32>
    %151 = vector.shape_cast %150 : vector<32x1xf32> to vector<32x1xf32>
    %152 = vector.broadcast %151 : vector<32x1xf32> to vector<32x32xf32>
    %cst_50 = arith.constant 9.99999974E-6 : f32
    %153 = vector.broadcast %cst_50 : f32 to vector<32x1xf32>
    %154 = arith.addf %137, %153 : vector<32x1xf32>
    %155 = math.rsqrt %154 : vector<32x1xf32>
    %156 = vector.shape_cast %155 : vector<32x1xf32> to vector<32x1xf32>
    %157 = vector.broadcast %156 : vector<32x1xf32> to vector<32x32xf32>
    %158 = tpu.concatenate %142, %147, %152, %157 in 1 : vector<32x32xf32>, vector<32x32xf32>, vector<32x32xf32>, vector<32x32xf32> -> vector<32x128xf32>
    %159 = arith.mulf %116, %158 : vector<32x128xf32>
    %cst_51 = arith.constant 0.000000e+00 : f32
    %160 = vector.broadcast %cst_51 : f32 to vector<32x128xf32>
    %161 = arith.maximumf %159, %160 : vector<32x128xf32>
    %162 = arith.truncf %161 : vector<32x128xf32> to vector<32x128xbf16>
    %c0_52 = arith.constant 0 : index
    %c0_53 = arith.constant 0 : index
    %163 = vector.load %arg6[%c0_52, %c0_53] : memref<32x128xbf16, #tpu.memory_space<vmem>>, vector<32x128xbf16>
    tpu.vector_store %arg6[%c0_52, %c0_53], %162 {strides = array<i32>} : memref<32x128xbf16, #tpu.memory_space<vmem>>, vector<32x128xbf16>,
    return
  }
  func.func @transform_0(%arg0: i32) -> (i32, i32) {
    %c0_i32 = arith.constant 0 : i32
    %c0_i32_0 = arith.constant 0 : i32
    return %arg0, %c0_i32 : i32, i32
  }
  func.func @transform_1(%arg0: i32) -> (i32, i32) {
    %c0_i32 = arith.constant 0 : i32
    %c0_i32_0 = arith.constant 0 : i32
    %c0_i32_1 = arith.constant 0 : i32
    return %c0_i32, %c0_i32_0 : i32, i32
  }
  func.func @transform_2(%arg0: i32) -> (i32, i32) {
    %c0_i32 = arith.constant 0 : i32
    %c0_i32_0 = arith.constant 0 : i32
    %c0_i32_1 = arith.constant 0 : i32
    return %c0_i32, %c0_i32_0 : i32, i32
  }
  func.func @transform_3(%arg0: i32) -> (i32, i32) {
    %c0_i32 = arith.constant 0 : i32
    %c0_i32_0 = arith.constant 0 : i32
    %c0_i32_1 = arith.constant 0 : i32
    return %c0_i32, %c0_i32_0 : i32, i32
  }
  func.func @transform_4(%arg0: i32) -> (i32, i32) {
    %c0_i32 = arith.constant 0 : i32
    %c0_i32_0 = arith.constant 0 : i32
    %c0_i32_1 = arith.constant 0 : i32
    return %c0_i32, %c0_i32_0 : i32, i32
  }
  func.func @transform_5(%arg0: i32) -> (i32, i32) {
    %c0_i32 = arith.constant 0 : i32
    %c0_i32_0 = arith.constant 0 : i32
    return %arg0, %c0_i32 : i32, i32
  }
}

</mosaic_0001>

<bundles_post_ra>
// kernel: tpu_custom_call.1
= control target key start
LH: loop header
LB: loop body
LE: loop exit
PB: predicated region body
PF: predicated region fallthrough
CT: control target
= control target key end

     0   :  { %10 = vsyncpa [#allocation3], 0  ;;  %s2347_s0 = inlined_call_operand.hbm [shape: bf16[64,128], index: 0, kind: input, shape index: {}]   ;;  %s2348_s1 = inlined_call_operand.hbm [shape: bf16[128,256], index: 1, kind: input, shape index: {}]   ;;  %s2349_s2 = inlined_call_operand.vmem [shape: f32[1,256], index: 2, kind: input, shape index: {}]   ;;  %s2350_s3 = inlined_call_operand.hbm [shape: bf16[256,128], index: 3, kind: input, shape index: {}]   ;;  %s2351_s4 = inlined_call_operand.vmem [shape: f32[1,128], index: 4, kind: input, shape index: {}]   ;;  %s2352_s5 = inlined_call_operand.hbm [shape: bf16[64,128], index: 5, kind: output, shape index: {}]  }
   0x1   :  { %12 = vsyncpa [#allocation3 + $0x1], 0 }
   0x2   :  { %13 = vsyncpa [#allocation6], 0 }
   0x3   :  { %14 = vsyncpa [#allocation4], 0 }
   0x4   :  { %16 = vsyncpa [#allocation4 + $0x1], 0  ;;  %s1808_s18 = smov 0   ;;  %s1810_s19 = smov 0  }
   0x5   :  { %s1812_s20 = smov 0   ;;  %s1814_s21 = smov 0  }
   0x6 LB: > { %s1829_s22 = sadd.s32 4294967295, %s1763_s21   ;;  %s1323_s23 = sadd.s32 4294967294, %s1763_s21   ;;  %s1763_s21 = sphi %s1814_s21, %s2372_s21   ;;  %s1759_s20 = sphi %s1812_s20, %s2371_s20   ;;  %s1755_s19 = sphi %s1810_s19, %s2370_s19   ;;  %s1751_s18 = sphi %s1808_s18, %s2369_s18  }
   0x7   : > { %p42_p0 = scmp.ne.s32.totalorder %s1755_s19, %s1751_s18  ;;  %p2353_p1 = scmp.eq.s32.totalorder %s1829_s22, 0 }
   0x8   : > { %p156_p3 = scmp.eq.s32.totalorder %s1323_s23, 1  ;;  %p1324_p5 = scmp.ge.s32.totalorder %s1763_s21, 1 }
   0x9   : > { %p1838_p4 = por %p2353_p1, %p42_p0  ;;  %p163_p7 = scmp.lt.s32.totalorder %s1763_s21, 3 }
   0xa   : > { %p1843_p6 = por %p156_p3, %p42_p0  ;;  %s1765_s27 = smov [#allocation5]  }
   0xb   : > { %s2356_s24 = scalar_select %p1838_p4, 1, 0 }
   0xc   : > { %s2357_s25 = scalar_select %p1843_p6, 1, 0 }
   0xd   : > { %p1848_p8 = pnand %p1324_p5, %p163_p7  ;;  %s175_s28 = sshll.u32 %s1765_s27, 4  ;;  %s1852_s28 = int_to_ptr.vmem [resolvable:$true] %s175_s28 }
   0xe   : > { %s1766_s30 = smov [#allocation7]   ;;  %s1607_s9 = scalar_lea.hbm %s2348_s1, 2048 }
   0xf   : > { %p1437_p9 = pneg %p1848_p8  ;;  %s191_s6 = sshll.u32 %s1766_s30, 4  ;;  %s1863_s6 = int_to_ptr.vmem [resolvable:$true] %s191_s6 }
  0x10   : > { %p1608_p12 = scmp.ne.s32.totalorder %s2348_s1, %s1607_s9  ;;  %p1614_p5 = scmp.lt.u32.totalorder %s1607_s9, %s2348_s1 }
  0x11   : > { %p1859_p11 = pnand %p1437_p9, %p2353_p1 }
  0x13   : > { %p1609_p13 = pneg %p1859_p11 }
  0x15   : > { %p1610_p0 = pnand %p1609_p13, %p1608_p12 }
  0x17   : > { %p1611_p3 = pneg %p1610_p0 }
  0x19   : > { %p1616_p7 = pnand %p1614_p5, %p1611_p3 }
  0x1b   : > { %1619 = shalt.err (!%p1616_p7)
}
  0x1c   : > { %s1620_s14 = scalar_lea.vmem %s1852_s28, 2048  ;;  %p1628_p2 = scmp.lt.s32.totalorder %s1852_s28, %s1852_s28 }
  0x1d   : > { %p1621_p9 = scmp.ne.s32.totalorder %s1852_s28, %s1620_s14  ;;  %p1629_p12 = scmp.lt.s32.totalorder %s1620_s14, %s1620_s14 }
  0x1f   : > { %p1623_p10 = pnand %p1621_p9, %p1609_p13  ;;  %p1630_p0 = por %p1629_p12, %p1628_p2 }
  0x21   : > { %p1624_p1 = pneg %p1623_p10 }
  0x23   : > { %p1631_p6 = pnand %p1630_p0, %p1624_p1 }
  0x25   : > { %1634 = shalt.err (!%p1631_p6)
}
  0x26   : > { %s1767_s15 = smov 128   ;;  %s1768_s16 = smov 8  }
  0x27   : > { %1440 = dma.hbm_to_vmem [thread:$0]  (!%p1859_p11), %s2348_s1, 2048, %s1852_s28, [#allocation6], %s1767_s15, %s1767_s15, %s1768_s16  }
  0x28   : > { %s1635_s7 = scalar_lea.hbm %s2350_s3, 2048 }
  0x29   : > { %p1636_p2 = scmp.ne.s32.totalorder %s2350_s3, %s1635_s7  ;;  %p1642_p10 = scmp.lt.u32.totalorder %s1635_s7, %s2350_s3 }
  0x2b   : > { %p1638_p1 = pnand %p1636_p2, %p1609_p13 }
  0x2d   : > { %p1639_p6 = pneg %p1638_p1 }
  0x2f   : > { %p1644_p3 = pnand %p1642_p10, %p1639_p6 }
  0x31   : > { %1647 = shalt.err (!%p1644_p3)
}
  0x32   : > { %s1648_s28 = scalar_lea.vmem %s1863_s6, 2048  ;;  %p1656_p12 = scmp.lt.s32.totalorder %s1863_s6, %s1863_s6 }
  0x33   : > { %p1649_p5 = scmp.ne.s32.totalorder %s1863_s6, %s1648_s28  ;;  %p1657_p0 = scmp.lt.s32.totalorder %s1648_s28, %s1648_s28 }
  0x35   : > { %p1651_p7 = pnand %p1649_p5, %p1609_p13  ;;  %p1658_p2 = por %p1657_p0, %p1656_p12 }
  0x37   : > { %p1652_p9 = pneg %p1651_p7 }
  0x39   : > { %p1659_p1 = pnand %p1658_p2, %p1652_p9 }
  0x3b   : > { %1662 = shalt.err (!%p1659_p1)
}
  0x3c   : > { %s1769_s12 = smov 64   ;;  %s1770_s13 = smov 4  }
  0x3d   : > { %1443 = dma.hbm_to_vmem [thread:$0]  (!%p1859_p11), %s2350_s3, 2048, %s1863_s6, [#allocation6], %s1769_s12, %s1769_s12, %s1770_s13  }
  0x3e   : > { %s1921_s16 = sadd.s32 1, %s1763_s21   ;;  %s29_s23 = sadd.s32 1, %s1759_s20 }
  0x3f   : > { %s26_s17 = ssub.s32 %s1763_s21, %s1921_s16  ;;  %p36_p6 = scmp.ne.s32.totalorder %s1759_s20, %s1755_s19 }
  0x40   : > { %p27_p13 = scmp.eq.s32.totalorder %s26_s17, 0  ;;  %p37_p10 = scmp.eq.s32.totalorder %s1763_s21, 0 }
  0x41   : > { %p2360_p5 = scmp.eq.s32.totalorder %s1829_s22, 1  ;;  %p1454_p9 = scmp.lt.s32.totalorder %s1763_s21, 2 }
  0x42   : > { %s1930_s27 = scalar_select %p27_p13, %s1759_s20, %s29_s23  }
  0x43   : > { %p38_p3 = por %p37_p10, %p36_p6  ;;  %p1934_p7 = por %p2360_p5, %p36_p6 }
  0x44   : > { %s208_s30 = sand.u32 1, %s1759_s20   ;;  %s1380_s6 = sshll.u32 %s1763_s21, 8 }
  0x45   : > { %s2361_s29 = scalar_select %p1934_p7, 1, 0 }
  0x46   : > { %s1328_s7 = sshll.u32 %s208_s30, 4  ;;  %s1944_s10 = scalar_lea.hbm %s2347_s0, %s1380_s6 }
  0x47   : > { %s212_s11 = scalar_lea.vmem [#allocation2], %s1328_s7  ;;  %p1948_p11 = pnand %p1454_p9, %p38_p3 }
  0x48   : > { %s219_s28 = sshll.u32 %s212_s11, 4  ;;  %s1952_s15 = scalar_lea.sflag [#allocation3], %s208_s30  ;;  %s1946_s28 = int_to_ptr.vmem [resolvable:$true] %s219_s28 }
  0x49   : > { %s1663_s17 = scalar_lea.hbm %s1944_s10, 256  ;;  %p1665_p0 = pneg %p1948_p11 }
  0x4a   : > { %p1664_p12 = scmp.ne.s32.totalorder %s1944_s10, %s1663_s17  ;;  %s1668_s6 = scalar_lea.hbm %s2347_s0, 512 }
  0x4b   : > { %p1669_p13 = scmp.lt.u32.totalorder %s1944_s10, %s2347_s0  ;;  %p1670_p6 = scmp.lt.u32.totalorder %s1668_s6, %s1663_s17 }
  0x4c   : > { %p1666_p2 = pnand %p1665_p0, %p1664_p12  ;;  %p1672_p3 = scmp.lt.u32.totalorder %s1663_s17, %s1944_s10 }
  0x4d   : > { %p1671_p10 = por %p1670_p6, %p1669_p13 }
  0x4e   : > { %p1667_p1 = pneg %p1666_p2 }
  0x4f   : > { %p1673_p5 = por %p1672_p3, %p1671_p10 }
  0x51   : > { %p1674_p9 = pnand %p1673_p5, %p1667_p1 }
  0x53   : > { %1677 = shalt.err (!%p1674_p9)
}
  0x54   : > { %s1678_s30 = scalar_lea.vmem %s1946_s28, 256  ;;  %s1771_s11 = smov [#allocation2]  }
  0x55   : > { %p1679_p12 = scmp.ne.s32.totalorder %s1946_s28, %s1678_s30  ;;  %s1683_s23 = sshll.u32 %s1771_s11, 4  ;;  %s1684_s23 = int_to_ptr.vmem [resolvable:$false] %s1683_s23 }
  0x56   : > { %s1685_s7 = scalar_lea.vmem %s1684_s23, 512  ;;  %p1686_p4 = scmp.lt.s32.totalorder %s1946_s28, %s1684_s23 }
  0x57   : > { %p1681_p2 = pnand %p1679_p12, %p1665_p0  ;;  %p1687_p13 = scmp.lt.s32.totalorder %s1685_s7, %s1678_s30 }
  0x59   : > { %p1682_p7 = pneg %p1681_p2  ;;  %p1688_p6 = por %p1687_p13, %p1686_p4 }
  0x5b   : > { %p1689_p10 = pnand %p1688_p6, %p1682_p7 }
  0x5d   : > { %1692 = shalt.err (!%p1689_p10)
}
  0x5e   : > { %1447 = dma.hbm_to_vmem [thread:$0]  (!%p1948_p11), %s1944_s10, 256, %s1946_s28, %s1952_s15, %s1769_s12, %s1769_s12, %s1770_s13  }
  0x5f   : > { %231 = sbr.rel (%p1848_p8) target bundleno = 1883 (0x75b), region = 40  ;;  %s1986_s17 = sand.u32 (!%p1848_p8), 1, %s1755_s19  }
  0x60   : > { %s1332_s6 = sshll.u32 (!%p1848_p8), %s1986_s17, 4  ;;  %s234_s8 = scalar_lea.sflag (!%p1848_p8), [#allocation3], %s1986_s17 }
  0x61   : > { %s1992_s14 = scalar_lea.vmem (!%p1848_p8), [#allocation2], %s1332_s6  ;;  %p2363_p4 = scmp.ne.s32.totalorder (!%p1848_p8), %s2356_s24, 0 }
  0x66   : > { %1738 = dma.done.wait (%p2363_p4), %s234_s8, 256  }
  0x67   : > { %1740 = vsyncadd (%p2363_p4), %s234_s8, 4294967040  ;;  %p2364_p7 = scmp.eq.s32.totalorder %s1829_s22, 0 }
  0x69   : > { %1742 = dma.done.wait (%p2364_p7), [#allocation6], 4096   ;;  %p2365_p8 = pmov %p2364_p7 }
  0x6a   : > { %v1772_v0 = vmov 0   ;;  %v1501_v1 = vld [vmem:[#allocation5 + $0x4] ss:$8 sps:$4 sm:$0xff]   ;;  %v1503_v2 = vld [vmem:[#allocation5] ss:$8 sps:$4 sm:$0xff]   ;;  %v297_v19 = vlaneseq  ;;  %s1773_s12 = smov 64  }
  0x6b   : > { %1744 = vsyncadd (%p2365_p8), [#allocation6], 4294963200  ;;  %431 = vmatprep.mubr.bf16.mxu0 %v1772_v0  ;;  %399 = vmatprep.subr.bf16.mxu0 %v1501_v1  ;;  %v1504_v3 = vld [vmem:[#allocation5 + $0x14] ss:$8 sps:$4 sm:$0xff]   ;;  %v1506_v4 = vld [vmem:[#allocation5 + $0x10] ss:$8 sps:$4 sm:$0xff]  }
  0x6c   : > { %400 = vmatpush1.bf16.msra.mxu0 %v1503_v2  ;;  %v1507_v5 = vld [vmem:[#allocation5 + $0x24] ss:$8 sps:$4 sm:$0xff]   ;;  %v1509_v6 = vld [vmem:[#allocation5 + $0x20] ss:$8 sps:$4 sm:$0xff]   ;;  %v1510_v7 = vld [vmem:[#allocation5 + $0x34] ss:$8 sps:$4 sm:$0xff]  }
  0x6d   : > { %401 = vmatprep.subr.bf16.mxu0 %v1504_v3  ;;  %v1512_v8 = vld [vmem:[#allocation5 + $0x30] ss:$8 sps:$4 sm:$0xff]   ;;  %v1513_v9 = vld [vmem:[#allocation5 + $0x44] ss:$8 sps:$4 sm:$0xff]   ;;  %v1515_v10 = vld [vmem:[#allocation5 + $0x40] ss:$8 sps:$4 sm:$0xff]  }
  0x6e   : > { %v1516_v11 = vld [vmem:[#allocation5 + $0x54] ss:$8 sps:$4 sm:$0xff]   ;;  %v1518_v12 = vld [vmem:[#allocation5 + $0x50] ss:$8 sps:$4 sm:$0xff]   ;;  %v1519_v13 = vld [vmem:[#allocation5 + $0x64] ss:$8 sps:$4 sm:$0xff]  }
  0x6f   : > { %v1521_v14 = vld [vmem:[#allocation5 + $0x60] ss:$8 sps:$4 sm:$0xff]   ;;  %v1522_v15 = vld [vmem:[#allocation5 + $0x74] ss:$8 sps:$4 sm:$0xff]   ;;  %v1524_v16 = vld [vmem:[#allocation5 + $0x70] ss:$8 sps:$4 sm:$0xff]  }
  0x70   : > { %402 = vmatpush1.bf16.msra.mxu0 %v1506_v4  ;;  %v1525_v17 = vld [vmem:[%s1992_s14] sm:$0xff]   ;;  %v1526_v18 = vld [vmem:[%s1992_s14 + $0x8] sm:$0xff]   ;;  %v298_v20 = vshrl.u32 %v297_v19, 7  ;;  %vm452_vm0 = vcmask 523264   ;;  %s1774_s28 = smov 96   ;;  %s1775_s15 = smov 32  }
  0x71   : > { %403 = vmatprep.subr.bf16.mxu0 %v1507_v5  ;;  %v295_v22 = vld [vmem:[%s2349_s2] sm:$0x3]  ;;  %vm914_vm1 = vcmask 261120   ;;  %vm1028_vm2 = vcmask 785408   ;;  %s2280_s9 = scalar_lea.vmem [#allocation8], %s1332_s6  ;;  %s1385_s30 = sshll.u32 %s1829_s22, 8 }
  0x72   : > { %v299_v21 = vsub.s32 0, %v298_v20  ;;  %v303_v23 = vsub.s32 1, %v298_v20  ;;  %s1231_s11 = sshll.u32 %s2280_s9, 4  ;;  %s2298_s6 = scalar_lea.hbm %s2352_s5, %s1385_s30  ;;  %s2300_s11 = int_to_ptr.vmem [resolvable:$true] %s1231_s11 }
  0x73   : > { %s1218_s8 = scalar_lea.sflag [#allocation4], %s1986_s17  ;;  %s1693_s14 = scalar_lea.vmem %s2300_s11, 256 }
  0x74   : > { %404 = vmatpush1.bf16.msra.mxu0 %v1509_v6  ;;  %v300_v24 = vrot.slane %v295_v22, %v299_v21  ;;  %v304_v25 = vrot.slane %v295_v22, %v303_v23  ;;  %p1694_p11 = scmp.ne.s32.totalorder %s2300_s11, %s1693_s14  ;;  %p2366_p0 = scmp.ne.s32.totalorder %s2361_s29, 0 }
  0x75   : > { %405 = vmatprep.subr.bf16.mxu0 %v1510_v7  ;;  %s1776_s22 = smov [#allocation8]  }
  0x76   : > { %p1695_p1 = pnand %p1694_p11, %p2366_p0  ;;  %s1697_s24 = sshll.u32 %s1776_s22, 4  ;;  %s1698_s24 = int_to_ptr.vmem [resolvable:$false] %s1697_s24 }
  0x77   : > { %s1699_s26 = scalar_lea.vmem %s1698_s24, 512  ;;  %p1700_p5 = scmp.lt.s32.totalorder %s2300_s11, %s1698_s24 }
  0x78   : > { %406 = vmatpush1.bf16.msra.mxu0 %v1512_v8  ;;  %p1696_p3 = pneg %p1695_p1  ;;  %p1701_p9 = scmp.lt.s32.totalorder %s1699_s26, %s1693_s14 }
  0x79   : > { %407 = vmatprep.subr.bf16.mxu0 %v1513_v9 }
  0x7a   : > { %p1702_p12 = por %p1701_p9, %p1700_p5 }
  0x7c   : > { %408 = vmatpush1.bf16.msra.mxu0 %v1515_v10  ;;  %p1703_p2 = pnand %p1702_p12, %p1696_p3 }
  0x7d   : > { %409 = vmatprep.subr.bf16.mxu0 %v1516_v11 }
  0x80   : > { %410 = vmatpush1.bf16.msra.mxu0 %v1518_v12 }
  0x81   : > { %411 = vmatprep.subr.bf16.mxu0 %v1519_v13 }
  0x84   : > { %412 = vmatpush1.bf16.msra.mxu0 %v1521_v14 }
  0x85   : > { %413 = vmatprep.subr.bf16.mxu0 %v1522_v15 }
  0x88   : > { %414 = vmatpush1.bf16.msra.mxu0 %v1524_v16 }
  0x8b   : > { %432 = vmatmul.mubr.bf16.vlgmr.msra.gmra.mrb[0].mxu0 %v1525_v17 }
  0x8c   : > { %441 = vmatprep.mubr.bf16.mxu0 %v1772_v0 }
  0x93   : > { %442 = vmatmul.mubr.bf16.gmra.mrb[4].mxu0 %v1526_v18 }
 0x15e   : > { %v433_v26 = vpop.f32.mrb[0].mxu0 }
 0x15f   : > { %v2007_v27 = vadd.f32 %v433_v26, %v300_v24  ;;  %v435_v28 = vpop.f32.mrb[1].mxu0 }
 0x160   : > { %v2009_v29 = vadd.f32 %v435_v28, %v304_v25  ;;  %v437_v30 = vpop.f32.mrb[2].mxu0 }
 0x161   : > { %v439_v31 = vpop.f32.mrb[3].mxu0  ;;  %474 = vrot.lane.b32.xlu1 %v2007_v27, %s1773_s12  ;;  %v2015_v32 = vadd.f32 %v437_v30, %v300_v24  ;;  %v453_v46 = vsel %vm452_vm0, %v2007_v27, 0.0 }
 0x162   : > { %522 = vrot.lane.b32.xlu0 %v2009_v29, %s1773_s12  ;;  %v2017_v33 = vadd.f32 %v439_v31, %v304_v25  ;;  %v502_v42 = vsel %vm452_vm0, %v2009_v29, 0.0 }
 0x163   : > { %v456_v43 = vsel %vm452_vm0, %v2015_v32, 0.0 }
 0x164   : > { %v505_v45 = vsel %vm452_vm0, %v2017_v33, 0.0 }
 0x165   : > { %476 = vrot.lane.b32.xlu1 %v2015_v32, %s1773_s12 }
 0x166   : > { %v443_v34 = vpop.f32.mrb[4].mxu0  ;;  %524 = vrot.lane.b32.xlu0 %v2017_v33, %s1773_s12 }
 0x167   : > { %v445_v35 = vpop.f32.mrb[5].mxu0  ;;  %v2025_v39 = vadd.f32 %v443_v34, %v300_v24 }
 0x168   : > { %v2023_v36 = vadd.f32 %v445_v35, %v304_v25  ;;  %v447_v37 = vpop.f32.mrb[6].mxu0 }
 0x169   : > { %v449_v38 = vpop.f32.mrb[7].mxu0  ;;  %v2031_v41 = vadd.f32 %v447_v37, %v300_v24  ;;  %v459_v48 = vsel %vm452_vm0, %v2025_v39, 0.0 }
 0x16a   : > { %v2027_v40 = vadd.f32 %v449_v38, %v304_v25  ;;  %526 = vrot.lane.b32.xlu0 %v2023_v36, %s1773_s12  ;;  %v508_v47 = vsel %vm452_vm0, %v2023_v36, 0.0 }
 0x16b   : > { %v462_v61 = vsel %vm452_vm0, %v2031_v41, 0.0 }
 0x16c   : > { %528 = vrot.lane.b32.xlu1 %v2027_v40, %s1773_s12  ;;  %v511_v44 = vsel %vm452_vm0, %v2027_v40, 0.0 }
 0x16e   : > { %478 = vrot.lane.b32.xlu0 %v2025_v39, %s1773_s12 }
 0x170   : > { %480 = vrot.lane.b32.xlu1 %v2031_v41, %s1773_s12 }
 0x18d   : > { %503 = vadd.xlane.f32.xlu0 %v502_v42 }
 0x191   : > { %457 = vadd.xlane.f32.xlu0 %v456_v43 }
 0x194   : > { %506 = vadd.xlane.f32.xlu1 %v505_v45 }
 0x195   : > { %512 = vadd.xlane.f32.xlu0 %v511_v44 }
 0x198   : > { %454 = vadd.xlane.f32.xlu1 %v453_v46 }
 0x19c   : > { %509 = vadd.xlane.f32.xlu1 %v508_v47 }
 0x1a0   : > { %460 = vadd.xlane.f32.xlu1 %v459_v48 }
 0x1d3   : > { %v475_v49 = vpop.permute.xlu1 %474 }
 0x1d4   : > { %v523_v50 = vpop.permute.xlu0 %522  ;;  %v486_v51 = vsel %vm452_vm0, %v475_v49, 0.0 }
 0x1d5   : > { %487 = vadd.xlane.f32.xlu1 %v486_v51  ;;  %v534_v52 = vsel %vm452_vm0, %v523_v50, 0.0 }
 0x1d6   : > { %535 = vadd.xlane.f32.xlu0 %v534_v52 }
 0x1d7   : > { %v477_v53 = vpop.permute.xlu1 %476 }
 0x1d8   : > { %v525_v54 = vpop.permute.xlu0 %524  ;;  %v489_v55 = vsel %vm452_vm0, %v477_v53, 0.0 }
 0x1d9   : > { %v537_v57 = vsel %vm452_vm0, %v525_v54, 0.0 }
 0x1da   : > { %490 = vadd.xlane.f32.xlu0 %v489_v55 }
 0x1dc   : > { %v527_v56 = vpop.permute.xlu0 %526 }
 0x1dd   : > { %v540_v58 = vsel %vm452_vm0, %v527_v56, 0.0 }
 0x1de   : > { %538 = vadd.xlane.f32.xlu0 %v537_v57  ;;  %541 = vadd.xlane.f32.xlu1 %v540_v58  ;;  %v529_v59 = vpop.permute.xlu1 %528 }
 0x1df   : > { %v543_v63 = vsel %vm452_vm0, %v529_v59, 0.0 }
 0x1e0   : > { %v479_v60 = vpop.permute.xlu0 %478 }
 0x1e1   : > { %v492_v62 = vsel %vm452_vm0, %v479_v60, 0.0 }
 0x1e2   : > { %463 = vadd.xlane.f32.xlu0 %v462_v61  ;;  %493 = vadd.xlane.f32.xlu1 %v492_v62  ;;  %v481_v0 = vpop.permute.xlu1 %480 }
 0x1e3   : > { %v495_v1 = vsel %vm452_vm0, %v481_v0, 0.0 }
 0x1e6   : > { %544 = vadd.xlane.f32.xlu0 %v543_v63 }
 0x1ea   : > { %496 = vadd.xlane.f32.xlu0 %v495_v1 }
 0x21a   : > { %v504_v4 = vpop.xlane.xlu0 %503 }
 0x21b   : > { %v514_v12 = vmul.f32 0.015625, %v504_v4 }
 0x21e   : > { %v458_v6 = vpop.xlane.xlu0 %457 }
 0x21f   : > { %v467_v19 = vmul.f32 0.015625, %v458_v6 }
 0x221   : > { %v507_v2 = vpop.xlane.xlu1 %506 }
 0x222   : > { %v513_v8 = vpop.xlane.xlu0 %512  ;;  %v515_v26 = vmul.f32 0.015625, %v507_v2 }
 0x225   : > { %v455_v3 = vpop.xlane.xlu1 %454 }
 0x226   : > { %v466_v13 = vmul.f32 0.015625, %v455_v3 }
 0x229   : > { %v510_v5 = vpop.xlane.xlu1 %509 }
 0x22a   : > { %v516_v28 = vmul.f32 0.015625, %v510_v5 }
 0x22d   : > { %v461_v7 = vpop.xlane.xlu1 %460 }
 0x22e   : > { %v468_v43 = vmul.f32 0.015625, %v461_v7 }
 0x262   : > { %v488_v9 = vpop.xlane.xlu1 %487 }
 0x263   : > { %v498_v10 = vmul.f32 0.015625, %v488_v9  ;;  %v536_v11 = vpop.xlane.xlu0 %535 }
 0x264   : > { %v546_v14 = vmul.f32 0.015625, %v536_v11 }
 0x265   : > { %v550_v15 = vsel %vm452_vm0, %v466_v13, %v498_v10 }
 0x266   : > { %v554_v16 = vsel %vm452_vm0, %v514_v12, %v546_v14  ;;  %v2071_v22 = vsub.f32 %v2007_v27, %v550_v15  ;;  %v1527_v15 = vld [vmem:[#allocation7 + $0x40] sm:$0xff]  }
 0x267   : > { %v491_v17 = vpop.xlane.xlu0 %490  ;;  %v2066_v18 = vsub.f32 %v2009_v29, %v554_v16  ;;  %v1528_v16 = vld [vmem:[#allocation7] sm:$0xff]   ;;  %1397 = vmatprep.subr.bf16.mxu1 %v1527_v15 }
 0x268   : > { %v499_v20 = vmul.f32 0.015625, %v491_v17  ;;  %v566_v29 = vmul.f32 %v2071_v22, %v2071_v22  ;;  %1398 = vmatpush3.bf16.msra.mxu1 %v1528_v16 }
 0x269   : > { %v567_v21 = vmul.f32 %v2066_v18, %v2066_v18 }
 0x26a   : > { %v551_v23 = vsel %vm452_vm0, %v467_v19, %v499_v20  ;;  %v1529_v19 = vld [vmem:[#allocation7 + $0x48] sm:$0xff]  }
 0x26b   : > { %v539_v24 = vpop.xlane.xlu0 %538  ;;  %642 = vrot.lane.b32.xlu1 %v567_v21, %s1773_s12  ;;  %v542_v25 = vpop.xlane.xlu1 %541  ;;  %v2078_v34 = vsub.f32 %v2015_v32, %v551_v23  ;;  %v622_v59 = vsel %vm452_vm0, %v567_v21, 0.0  ;;  %v1530_v21 = vld [vmem:[#allocation7 + $0x8] sm:$0xff]   ;;  %1399 = vmatprep.subr.bf16.mxu1 %v1529_v19 }
 0x26c   : > { %v547_v30 = vmul.f32 0.015625, %v539_v24  ;;  %v548_v31 = vmul.f32 0.015625, %v542_v25  ;;  %1400 = vmatpush3.bf16.msra.mxu1 %v1530_v21  ;;  %v1531_v24 = vld [vmem:[#allocation7 + $0x50] sm:$0xff]  }
 0x26d   : > { %v568_v32 = vmul.f32 %v2078_v34, %v2078_v34  ;;  %1401 = vmatprep.subr.bf16.mxu1 %v1531_v24  ;;  %v1532_v25 = vld [vmem:[#allocation7 + $0x10] sm:$0xff]  }
 0x26e   : > { %v555_v35 = vsel %vm452_vm0, %v515_v26, %v547_v30  ;;  %v556_v27 = vsel %vm452_vm0, %v516_v28, %v548_v31  ;;  %v1533_v26 = vld [vmem:[#allocation7 + $0x58] sm:$0xff]   ;;  %v1535_v30 = vld [vmem:[#allocation7 + $0x60] sm:$0xff]  }
 0x26f   : > { %v464_v37 = vpop.xlane.xlu0 %463  ;;  %594 = vrot.lane.b32.xlu1 %v566_v29, %s1773_s12  ;;  %v494_v38 = vpop.xlane.xlu1 %493  ;;  %v2084_v42 = vsub.f32 %v2017_v33, %v555_v35  ;;  %v2091_v46 = vsub.f32 %v2023_v36, %v556_v27  ;;  %v517_v33 = vmul.f32 0.015625, %v513_v8  ;;  %v577_v60 = vsel %vm452_vm0, %v568_v32, 0.0  ;;  %v1534_v28 = vld [vmem:[#allocation7 + $0x18] sm:$0xff]   ;;  %v1536_v31 = vld [vmem:[#allocation7 + $0x20] sm:$0xff]   ;;  %v1538_v35 = vld [vmem:[#allocation7 + $0x28] sm:$0xff]  }
 0x270   : > { %v500_v44 = vmul.f32 0.015625, %v494_v38  ;;  %v469_v54 = vmul.f32 0.015625, %v464_v37  ;;  %1402 = vmatpush3.bf16.msra.mxu1 %v1532_v25  ;;  %v1539_v27 = vld [vmem:[#allocation7 + $0x70] sm:$0xff]   ;;  %v1541_v38 = vld [vmem:[#allocation7 + $0x78] sm:$0xff]  }
 0x271   : > { %v569_v45 = vmul.f32 %v2084_v42, %v2084_v42  ;;  %v571_v50 = vmul.f32 %v2091_v46, %v2091_v46  ;;  %1403 = vmatprep.subr.bf16.mxu1 %v1533_v26  ;;  %v1540_v37 = vld [vmem:[#allocation7 + $0x30] sm:$0xff]  }
 0x272   : > { %v552_v47 = vsel %vm452_vm0, %v468_v43, %v500_v44  ;;  %v1542_v43 = vld [vmem:[#allocation7 + $0x38] sm:$0xff]  }
 0x273   : > { %v545_v48 = vpop.xlane.xlu0 %544  ;;  %644 = vrot.lane.b32.xlu0 %v569_v45, %s1773_s12  ;;  %596 = vrot.lane.b32.xlu1 %v568_v32, %s1773_s12  ;;  %v2099_v51 = vsub.f32 %v2025_v39, %v552_v47  ;;  %v625_v62 = vsel %vm452_vm0, %v569_v45, 0.0  ;;  %v628_v63 = vsel %vm452_vm0, %v571_v50, 0.0 }
 0x274   : > { %v549_v49 = vmul.f32 0.015625, %v545_v48  ;;  %1404 = vmatpush3.bf16.msra.mxu1 %v1534_v28 }
 0x275   : > { %v570_v57 = vmul.f32 %v2099_v51, %v2099_v51  ;;  %1405 = vmatprep.subr.bf16.mxu1 %v1535_v30 }
 0x276   : > { %v557_v52 = vsel %vm452_vm0, %v517_v33, %v549_v49 }
 0x277   : > { %v497_v53 = vpop.xlane.xlu0 %496  ;;  %646 = vrot.lane.b32.xlu0 %v571_v50, %s1773_s12  ;;  %v2104_v36 = vsub.f32 %v2027_v40, %v557_v52  ;;  %v580_v0 = vsel %vm452_vm0, %v570_v57, 0.0 }
 0x278   : > { %v501_v55 = vmul.f32 0.015625, %v497_v53  ;;  %1406 = vmatpush3.bf16.msra.mxu1 %v1536_v31 }
 0x279   : > { %v573_v56 = vmul.f32 %v2104_v36, %v2104_v36 }
 0x27a   : > { %v553_v58 = vsel %vm452_vm0, %v469_v54, %v501_v55 }
 0x27b   : > { %648 = vrot.lane.b32.xlu1 %v573_v56, %s1773_s12  ;;  %598 = vrot.lane.b32.xlu0 %v570_v57, %s1773_s12  ;;  %v2114_v39 = vsub.f32 %v2031_v41, %v553_v58  ;;  %v631_v61 = vsel %vm452_vm0, %v573_v56, 0.0  ;;  %v574_v41 = vsel %vm452_vm0, %v566_v29, 0.0  ;;  %v1537_v29 = vld [vmem:[#allocation7 + $0x68] sm:$0xff]  }
 0x27c   : > { %1407 = vmatprep.subr.bf16.mxu1 %v1537_v29 }
 0x27d   : > { %v572_v40 = vmul.f32 %v2114_v39, %v2114_v39  ;;  %1408 = vmatpush3.bf16.msra.mxu1 %v1538_v35 }
 0x27e   : > { %1409 = vmatprep.subr.bf16.mxu1 %v1539_v27 }
 0x27f   : > { %600 = vrot.lane.b32.xlu1 %v572_v40, %s1773_s12  ;;  %v583_v14 = vsel %vm452_vm0, %v572_v40, 0.0 }
 0x281   : > { %1410 = vmatpush3.bf16.msra.mxu1 %v1540_v37 }
 0x282   : > { %1411 = vmatprep.subr.bf16.mxu1 %v1541_v38 }
 0x285   : > { %1412 = vmatpush3.bf16.msra.mxu1 %v1542_v43 }
 0x29a   : > { %623 = vadd.xlane.f32.xlu0 %v622_v59 }
 0x29e   : > { %578 = vadd.xlane.f32.xlu0 %v577_v60 }
 0x2a2   : > { %632 = vadd.xlane.f32.xlu0 %v631_v61 }
 0x2a3   : > { %626 = vadd.xlane.f32.xlu1 %v625_v62 }
 0x2a7   : > { %575 = vadd.xlane.f32.xlu1 %v574_v41 }
 0x2ab   : > { %629 = vadd.xlane.f32.xlu1 %v628_v63 }
 0x2af   : > { %581 = vadd.xlane.f32.xlu1 %v580_v0 }
 0x2dd   : > { %v643_v1 = vpop.permute.xlu1 %642 }
 0x2de   : > { %v654_v2 = vsel %vm452_vm0, %v643_v1, 0.0 }
 0x2df   : > { %655 = vadd.xlane.f32.xlu0 %v654_v2 }
 0x2e1   : > { %v595_v3 = vpop.permute.xlu1 %594 }
 0x2e2   : > { %v606_v4 = vsel %vm452_vm0, %v595_v3, 0.0 }
 0x2e3   : > { %607 = vadd.xlane.f32.xlu1 %v606_v4 }
 0x2e5   : > { %v645_v5 = vpop.permute.xlu0 %644  ;;  %v597_v6 = vpop.permute.xlu1 %596 }
 0x2e6   : > { %v609_v7 = vsel %vm452_vm0, %v597_v6, 0.0  ;;  %v657_v10 = vsel %vm452_vm0, %v645_v5, 0.0 }
 0x2e7   : > { %610 = vadd.xlane.f32.xlu0 %v609_v7 }
 0x2e9   : > { %v647_v8 = vpop.permute.xlu0 %646 }
 0x2ea   : > { %v660_v9 = vsel %vm452_vm0, %v647_v8, 0.0 }
 0x2eb   : > { %661 = vadd.xlane.f32.xlu1 %v660_v9  ;;  %658 = vadd.xlane.f32.xlu0 %v657_v10 }
 0x2ed   : > { %v599_v11 = vpop.permute.xlu0 %598  ;;  %v649_v12 = vpop.permute.xlu1 %648 }
 0x2ee   : > { %v612_v13 = vsel %vm452_vm0, %v599_v11, 0.0  ;;  %v663_v17 = vsel %vm452_vm0, %v649_v12, 0.0 }
 0x2ef   : > { %613 = vadd.xlane.f32.xlu1 %v612_v13  ;;  %584 = vadd.xlane.f32.xlu0 %v583_v14 }
 0x2f1   : > { %v601_v20 = vpop.permute.xlu1 %600 }
 0x2f2   : > { %v615_v23 = vsel %vm452_vm0, %v601_v20, 0.0 }
 0x2f3   : > { %664 = vadd.xlane.f32.xlu0 %v663_v17 }
 0x2f7   : > { %616 = vadd.xlane.f32.xlu0 %v615_v23 }
 0x327   : > { %v624_v45 = vpop.xlane.xlu0 %623 }
 0x328   : > { %v634_v52 = vmul.f32 0.015625, %v624_v45 }
 0x32a   : > { %v686_v56 = vadd.f32 1e-05, %v634_v52 }
 0x32b   : > { %v579_v47 = vpop.xlane.xlu0 %578 }
 0x32c   : > { %v587_v53 = vmul.f32 0.015625, %v579_v47  ;;  %1543 = vrsqrt.f32 %v686_v56 }
 0x32e   : > { %v671_v58 = vadd.f32 1e-05, %v587_v53 }
 0x32f   : > { %v633_v33 = vpop.xlane.xlu0 %632 }
 0x330   : > { %v627_v44 = vpop.xlane.xlu1 %626  ;;  %1545 = vrsqrt.f32 %v671_v58  ;;  %v637_v7 = vmul.f32 0.015625, %v633_v33 }
 0x331   : > { %v635_v60 = vmul.f32 0.015625, %v627_v44 }
 0x332   : > { %v689_v15 = vadd.f32 1e-05, %v637_v7 }
 0x333   : > { %v687_v1 = vadd.f32 1e-05, %v635_v60 }
 0x334   : > { %v576_v32 = vpop.xlane.xlu1 %575 }
 0x335   : > { %v586_v40 = vmul.f32 0.015625, %v576_v32 }
 0x336   : > { %v1544_v16 = vpop.eup %1543 }
 0x337   : > { %v670_v63 = vadd.f32 1e-05, %v586_v40 }
 0x338   : > { %v630_v48 = vpop.xlane.xlu1 %629 }
 0x339   : > { %v636_v4 = vmul.f32 0.015625, %v630_v48 }
 0x33a   : > { %v1546_v19 = vpop.eup %1545 }
 0x33b   : > { %v688_v13 = vadd.f32 1e-05, %v636_v4 }
 0x33c   : > { %v582_v49 = vpop.xlane.xlu1 %581 }
 0x33d   : > { %v588_v10 = vmul.f32 0.015625, %v582_v49 }
 0x33f   : > { %v672_v20 = vadd.f32 1e-05, %v588_v10 }
 0x36c   : > { %v656_v50 = vpop.xlane.xlu0 %655 }
 0x36d   : > { %v666_v54 = vmul.f32 0.015625, %v656_v50 }
 0x36f   : > { %v694_v59 = vadd.f32 1e-05, %v666_v54 }
 0x370   : > { %v608_v55 = vpop.xlane.xlu1 %607 }
 0x371   : > { %v618_v57 = vmul.f32 0.015625, %v608_v55  ;;  %1547 = vrsqrt.f32 %v694_v59 }
 0x373   : > { %v678_v61 = vadd.f32 1e-05, %v618_v57 }
 0x374   : > { %v611_v62 = vpop.xlane.xlu0 %610 }
 0x375   : > { %v619_v41 = vmul.f32 0.015625, %v611_v62  ;;  %1549 = vrsqrt.f32 %v678_v61 }
 0x377   : > { %v679_v0 = vadd.f32 1e-05, %v619_v41 }
 0x378   : > { %v659_v2 = vpop.xlane.xlu0 %658  ;;  %v662_v3 = vpop.xlane.xlu1 %661 }
 0x379   : > { %1551 = vrsqrt.f32 %v679_v0  ;;  %v667_v5 = vmul.f32 0.015625, %v659_v2  ;;  %v668_v6 = vmul.f32 0.015625, %v662_v3 }
 0x37a   : > { %1553 = vrsqrt.f32 %v670_v63 }
 0x37b   : > { %v695_v8 = vadd.f32 1e-05, %v667_v5  ;;  %v696_v9 = vadd.f32 1e-05, %v668_v6  ;;  %1555 = vrsqrt.f32 %v687_v1  ;;  %v1548_v24 = vpop.eup %1547 }
 0x37c   : > { %v585_v11 = vpop.xlane.xlu0 %584  ;;  %v614_v12 = vpop.xlane.xlu1 %613  ;;  %v706_v27 = vsel %vm452_vm0, %v1544_v16, %v1548_v24 }
 0x37d   : > { %1557 = vrsqrt.f32 %v695_v8  ;;  %v620_v14 = vmul.f32 0.015625, %v614_v12  ;;  %v589_v21 = vmul.f32 0.015625, %v585_v11  ;;  %v711_v48 = vmul.f32 %v706_v27, %v2066_v18 }
 0x37e   : > { %1559 = vrsqrt.f32 %v696_v9 }
 0x37f   : > { %v680_v17 = vadd.f32 1e-05, %v620_v14  ;;  %1561 = vrsqrt.f32 %v688_v13  ;;  %v1550_v26 = vpop.eup %1549  ;;  %v673_v29 = vadd.f32 1e-05, %v589_v21  ;;  %v719_v55 = vmax.f32 %v711_v48, 0.0 }
 0x380   : > { %v665_v23 = vpop.xlane.xlu0 %664  ;;  %1563 = vrsqrt.f32 %v689_v15 }
 0x381   : > { %v669_v25 = vmul.f32 0.015625, %v665_v23  ;;  %1565 = vrsqrt.f32 %v680_v17 }
 0x382   : > { %1567 = vrsqrt.f32 %v672_v20 }
 0x383   : > { %v1552_v28 = vpop.eup %1551  ;;  %v697_v30 = vadd.f32 1e-05, %v669_v25 }
 0x384   : > { %v1554_v31 = vpop.eup %1553  ;;  %v617_v35 = vpop.xlane.xlu0 %616  ;;  %v703_v37 = vsel %vm452_vm0, %v1546_v19, %v1552_v28 }
 0x385   : > { %1569 = vrsqrt.f32 %v697_v30  ;;  %v621_v38 = vmul.f32 0.015625, %v617_v35  ;;  %v702_v43 = vsel %vm452_vm0, %v1554_v31, %v1550_v26  ;;  %v1556_v44 = vpop.eup %1555  ;;  %v712_v45 = vmul.f32 %v703_v37, %v2078_v34 }
 0x386   : > { %1571 = vrsqrt.f32 %v673_v29  ;;  %v710_v49 = vmul.f32 %v702_v43, %v2071_v22 }
 0x387   : > { %v1558_v32 = vpop.eup %1557  ;;  %v681_v47 = vadd.f32 1e-05, %v621_v38  ;;  %v720_v53 = vmax.f32 %v712_v45, 0.0 }
 0x388   : > { %v707_v33 = vsel %vm452_vm0, %v1556_v44, %v1558_v32  ;;  %v1560_v50 = vpop.eup %1559  ;;  %v718_v58 = vmax.f32 %v710_v49, 0.0 }
 0x389   : > { %1573 = vrsqrt.f32 %v681_v47  ;;  %v713_v52 = vmul.f32 %v707_v33, %v2084_v42  ;;  %v1562_v54 = vpop.eup %1561 }
 0x38a   : > { %v1564_v57 = vpop.eup %1563  ;;  %v708_v34 = vsel %vm452_vm0, %v1562_v54, %v1560_v50  ;;  %v726_v60 = vpack.c.bf16 %v720_v53, %v718_v58 }
 0x38b   : > { %v721_v56 = vmax.f32 %v713_v52, 0.0  ;;  %v1566_v40 = vpop.eup %1565  ;;  %v715_v22 = vmul.f32 %v708_v34, %v2091_v46 }
 0x38c   : > { %v1568_v18 = vpop.eup %1567 }
 0x38d   : > { %v727_v59 = vpack.c.bf16 %v721_v56, %v719_v55  ;;  %v704_v42 = vsel %vm452_vm0, %v1568_v18, %v1566_v40  ;;  %v723_v1 = vmax.f32 %v715_v22, 0.0 }
 0x38e   : > { %v714_v3 = vmul.f32 %v704_v42, %v2099_v51 }
 0x38f   : > { %v1570_v61 = vpop.eup %1569  ;;  %897 = vmatprep.mubr.bf16.mxu1 %v727_v59 }
 0x390   : > { %898 = vmatmul.mubr.bf16.vlgmr.msra.gmra.mrb[0].mxu1 %v726_v60  ;;  %v709_v62 = vsel %vm452_vm0, %v1564_v57, %v1570_v61  ;;  %v1572_v63 = vpop.eup %1571  ;;  %v722_v46 = vmax.f32 %v714_v3, 0.0 }
 0x391   : > { %v717_v41 = vmul.f32 %v709_v62, %v2104_v36  ;;  %v1354_v36 = vld [vmem:[%s2351_s4] ss:$0 sm:$0xff] }
 0x393   : > { %v1574_v0 = vpop.eup %1573  ;;  %v725_v2 = vmax.f32 %v717_v41, 0.0 }
 0x394   : > { %v705_v4 = vsel %vm452_vm0, %v1572_v63, %v1574_v0 }
 0x395   : > { %v729_v5 = vpack.c.bf16 %v725_v2, %v723_v1  ;;  %v716_v6 = vmul.f32 %v705_v4, %v2114_v39 }
 0x397   : > { %905 = vmatprep.mubr.bf16.mxu1 %v729_v5  ;;  %v724_v7 = vmax.f32 %v716_v6, 0.0 }
 0x399   : > { %v728_v8 = vpack.c.bf16 %v724_v7, %v722_v46 }
 0x39b   : > { %906 = vmatmul.mubr.bf16.gmra.mrb[4].mxu1 %v728_v8 }
 0x463   : > { %v1413_v9 = vpop.f32.mrb[0].mxu1 }
 0x464   : > { %v1414_v10 = vpop.f32.mrb[1].mxu1 }
 0x465   : > { %v1415_v11 = vadd.f32 %v1414_v10, %v1413_v9  ;;  %v1416_v12 = vpop.f32.mrb[2].mxu1 }
 0x466   : > { %v1417_v13 = vpop.f32.mrb[3].mxu1 }
 0x467   : > { %v2154_v51 = vadd.f32 %v1415_v11, %v1354_v36  ;;  %v1418_v14 = vadd.f32 %v1417_v13, %v1416_v12 }
 0x469   : > { %964 = vrot.lane.b32.xlu0 %v2154_v51, %s1773_s12  ;;  %936 = vrot.lane.b32.xlu1 %v2154_v51, %s1774_s28  ;;  %v2162_v15 = vadd.f32 %v1418_v14, %v1354_v36  ;;  %v915_v24 = vsel %vm914_vm1, %v2154_v51, 0.0 }
 0x46b   : > { %v918_v25 = vsel %vm914_vm1, %v2162_v15, 0.0 }
 0x46d   : > { %992 = vrot.lane.b32.xlu0 %v2154_v51, %s1775_s15 }
 0x46e   : > { %v1419_v39 = vpop.f32.mrb[4].mxu1 }
 0x46f   : > { %v1420_v16 = vpop.f32.mrb[5].mxu1 }
 0x470   : > { %v1421_v17 = vadd.f32 %v1420_v16, %v1419_v39  ;;  %v1422_v19 = vpop.f32.mrb[6].mxu1 }
 0x471   : > { %938 = vrot.lane.b32.xlu0 %v2162_v15, %s1774_s28  ;;  %v1423_v20 = vpop.f32.mrb[7].mxu1 }
 0x472   : > { %v1424_v21 = vadd.f32 %v1423_v20, %v1422_v19  ;;  %v2176_v26 = vadd.f32 %v1421_v17, %v1354_v36 }
 0x474   : > { %v2166_v23 = vadd.f32 %v1424_v21, %v1354_v36  ;;  %v921_v30 = vsel %vm914_vm1, %v2176_v26, 0.0 }
 0x476   : > { %v924_v28 = vsel %vm914_vm1, %v2166_v23, 0.0 }
 0x48d   : > { %916 = vadd.xlane.f32.xlu1 %v915_v24 }
 0x490   : > { %919 = vadd.xlane.f32.xlu0 %v918_v25 }
 0x49e   : > { %966 = vrot.lane.b32.xlu1 %v2162_v15, %s1773_s12 }
 0x4a2   : > { %994 = vrot.lane.b32.xlu1 %v2162_v15, %s1775_s15 }
 0x4a6   : > { %968 = vrot.lane.b32.xlu0 %v2176_v26, %s1773_s12  ;;  %940 = vrot.lane.b32.xlu1 %v2176_v26, %s1774_s28 }
 0x4aa   : > { %996 = vrot.lane.b32.xlu0 %v2176_v26, %s1775_s15 }
 0x4c9   : > { %925 = vadd.xlane.f32.xlu0 %v924_v28 }
 0x4ca   : > { %922 = vadd.xlane.f32.xlu1 %v921_v30 }
 0x4db   : > { %942 = vrot.lane.b32.xlu1 %v2166_v23, %s1774_s28  ;;  %v937_v31 = vpop.permute.xlu1 %936  ;;  %v965_v35 = vpop.permute.xlu0 %964 }
 0x4dc   : > { %v948_v29 = vsel %vm914_vm1, %v937_v31, 0.0  ;;  %v976_v37 = vsel %vm914_vm1, %v965_v35, 0.0 }
 0x4dd   : > { %949 = vadd.xlane.f32.xlu0 %v948_v29 }
 0x4df   : > { %970 = vrot.lane.b32.xlu1 %v2166_v23, %s1773_s12  ;;  %v993_v27 = vpop.permute.xlu0 %992 }
 0x4e0   : > { %v1004_v38 = vsel %vm914_vm1, %v993_v27, 0.0 }
 0x4e3   : > { %998 = vrot.lane.b32.xlu1 %v2166_v23, %s1775_s15  ;;  %v939_v43 = vpop.permute.xlu0 %938 }
 0x4e4   : > { %v951_v44 = vsel %vm914_vm1, %v939_v43, 0.0 }
 0x507   : > { %977 = vadd.xlane.f32.xlu1 %v976_v37 }
 0x50b   : > { %1005 = vadd.xlane.f32.xlu1 %v1004_v38 }
 0x50f   : > { %952 = vadd.xlane.f32.xlu1 %v951_v44 }
 0x51a   : > { %v917_v45 = vpop.xlane.xlu1 %916 }
 0x51b   : > { %v928_v63 = vmul.f32 0.03125, %v917_v45 }
 0x51d   : > { %v920_v32 = vpop.xlane.xlu0 %919 }
 0x51e   : > { %v967_v47 = vpop.permute.xlu1 %966  ;;  %v929_v36 = vmul.f32 0.03125, %v920_v32 }
 0x51f   : > { %v979_v48 = vsel %vm914_vm1, %v967_v47, 0.0 }
 0x520   : > { %980 = vadd.xlane.f32.xlu0 %v979_v48 }
 0x521   : > { %v969_v33 = vpop.permute.xlu0 %968 }
 0x522   : > { %v995_v49 = vpop.permute.xlu1 %994  ;;  %v982_v50 = vsel %vm914_vm1, %v969_v33, 0.0 }
 0x523   : > { %983 = vadd.xlane.f32.xlu1 %v982_v50  ;;  %v1007_v52 = vsel %vm914_vm1, %v995_v49, 0.0 }
 0x524   : > { %1008 = vadd.xlane.f32.xlu0 %v1007_v52 }
 0x525   : > { %v997_v53 = vpop.permute.xlu0 %996 }
 0x526   : > { %v941_v54 = vpop.permute.xlu1 %940  ;;  %v1010_v55 = vsel %vm914_vm1, %v997_v53, 0.0 }
 0x527   : > { %1011 = vadd.xlane.f32.xlu1 %v1010_v55  ;;  %v954_v56 = vsel %vm914_vm1, %v941_v54, 0.0 }
 0x528   : > { %955 = vadd.xlane.f32.xlu0 %v954_v56 }
 0x556   : > { %v926_v61 = vpop.xlane.xlu0 %925 }
 0x557   : > { %v923_v57 = vpop.xlane.xlu1 %922  ;;  %v931_v45 = vmul.f32 0.03125, %v926_v61 }
 0x558   : > { %v930_v21 = vmul.f32 0.03125, %v923_v57 }
 0x55b   : > { %v943_v58 = vpop.permute.xlu1 %942 }
 0x55c   : > { %v957_v34 = vsel %vm914_vm1, %v943_v58, 0.0 }
 0x55d   : > { %958 = vadd.xlane.f32.xlu0 %v957_v34 }
 0x55f   : > { %v971_v40 = vpop.permute.xlu1 %970 }
 0x560   : > { %v985_v59 = vsel %vm914_vm1, %v971_v40, 0.0 }
 0x561   : > { %986 = vadd.xlane.f32.xlu0 %v985_v59 }
 0x563   : > { %v999_v18 = vpop.permute.xlu1 %998 }
 0x564   : > { %v1013_v60 = vsel %vm914_vm1, %v999_v18, 0.0 }
 0x565   : > { %1014 = vadd.xlane.f32.xlu0 %v1013_v60 }
 0x56a   : > { %v950_v22 = vpop.xlane.xlu0 %949 }
 0x56b   : > { %v960_v42 = vmul.f32 0.03125, %v950_v22 }
 0x56d   : > { %v1020_v1 = vsel %vm914_vm1, %v928_v63, %v960_v42 }
 0x594   : > { %v978_v62 = vpop.xlane.xlu1 %977 }
 0x595   : > { %v988_v41 = vmul.f32 0.03125, %v978_v62 }
 0x597   : > { %v1024_v3 = vsel %vm452_vm0, %v1020_v1, %v988_v41 }
 0x598   : > { %v1006_v0 = vpop.xlane.xlu1 %1005 }
 0x599   : > { %v1016_v2 = vmul.f32 0.03125, %v1006_v0 }
 0x59b   : > { %v1029_v4 = vsel %vm1028_vm2, %v1024_v3, %v1016_v2 }
 0x59c   : > { %v2210_v5 = vsub.f32 %v2154_v51, %v1029_v4  ;;  %v953_v46 = vpop.xlane.xlu1 %952 }
 0x59d   : > { %v961_v8 = vmul.f32 0.03125, %v953_v46 }
 0x59e   : > { %v1037_v6 = vmul.f32 %v2210_v5, %v2210_v5 }
 0x59f   : > { %v1021_v11 = vsel %vm914_vm1, %v929_v36, %v961_v8 }
 0x5a0   : > { %1061 = vrot.lane.b32.xlu1 %v1037_v6, %s1774_s28  ;;  %v1041_v17 = vsel %vm914_vm1, %v1037_v6, 0.0 }
 0x5a4   : > { %1089 = vrot.lane.b32.xlu1 %v1037_v6, %s1773_s12 }
 0x5a8   : > { %1117 = vrot.lane.b32.xlu1 %v1037_v6, %s1775_s15 }
 0x5ad   : > { %v981_v7 = vpop.xlane.xlu0 %980 }
 0x5ae   : > { %v989_v9 = vmul.f32 0.03125, %v981_v7 }
 0x5b0   : > { %v1025_v13 = vsel %vm452_vm0, %v1021_v11, %v989_v9  ;;  %v984_v19 = vpop.xlane.xlu1 %983 }
 0x5b1   : > { %v1009_v10 = vpop.xlane.xlu0 %1008  ;;  %v990_v25 = vmul.f32 0.03125, %v984_v19 }
 0x5b2   : > { %v1017_v12 = vmul.f32 0.03125, %v1009_v10 }
 0x5b4   : > { %v1030_v51 = vsel %vm1028_vm2, %v1025_v13, %v1017_v12  ;;  %v1012_v28 = vpop.xlane.xlu1 %1011 }
 0x5b5   : > { %v2221_v14 = vsub.f32 %v2162_v15, %v1030_v51  ;;  %v956_v16 = vpop.xlane.xlu0 %955  ;;  %v1018_v30 = vmul.f32 0.03125, %v1012_v28 }
 0x5b6   : > { %v962_v20 = vmul.f32 0.03125, %v956_v16 }
 0x5b7   : > { %v1038_v39 = vmul.f32 %v2221_v14, %v2221_v14 }
 0x5b8   : > { %v1022_v24 = vsel %vm914_vm1, %v930_v21, %v962_v20 }
 0x5b9   : > { %1063 = vrot.lane.b32.xlu0 %v1038_v39, %s1774_s28  ;;  %v1026_v15 = vsel %vm452_vm0, %v1022_v24, %v990_v25  ;;  %v1044_v29 = vsel %vm914_vm1, %v1038_v39, 0.0 }
 0x5ba   : > { %v1031_v31 = vsel %vm1028_vm2, %v1026_v15, %v1018_v30 }
 0x5bb   : > { %v2233_v35 = vsub.f32 %v2176_v26, %v1031_v31 }
 0x5bd   : > { %1091 = vrot.lane.b32.xlu0 %v1038_v39, %s1773_s12  ;;  %v1039_v27 = vmul.f32 %v2233_v35, %v2233_v35 }
 0x5bf   : > { %v1047_v53 = vsel %vm914_vm1, %v1039_v27, 0.0 }
 0x5cc   : > { %1042 = vadd.xlane.f32.xlu1 %v1041_v17 }
 0x5dc   : > { %1045 = vadd.xlane.f32.xlu0 %v1044_v29 }
 0x5dd   : > { %1119 = vrot.lane.b32.xlu1 %v1038_v39, %s1775_s15 }
 0x5e1   : > { %1065 = vrot.lane.b32.xlu1 %v1039_v27, %s1774_s28 }
 0x5e5   : > { %1093 = vrot.lane.b32.xlu1 %v1039_v27, %s1773_s12 }
 0x5e9   : > { %1121 = vrot.lane.b32.xlu1 %v1039_v27, %s1775_s15 }
 0x5ea   : > { %v959_v37 = vpop.xlane.xlu0 %958 }
 0x5eb   : > { %v963_v43 = vmul.f32 0.03125, %v959_v37 }
 0x5ed   : > { %v1023_v26 = vsel %vm914_vm1, %v931_v45, %v963_v43 }
 0x5ee   : > { %v987_v38 = vpop.xlane.xlu0 %986 }
 0x5ef   : > { %v991_v44 = vmul.f32 0.03125, %v987_v38 }
 0x5f1   : > { %v1027_v48 = vsel %vm452_vm0, %v1023_v26, %v991_v44 }
 0x5f2   : > { %v1015_v32 = vpop.xlane.xlu0 %1014 }
 0x5f3   : > { %v1019_v47 = vmul.f32 0.03125, %v1015_v32 }
 0x5f5   : > { %v1032_v33 = vsel %vm1028_vm2, %v1027_v48, %v1019_v47 }
 0x5f6   : > { %v2245_v49 = vsub.f32 %v2166_v23, %v1032_v33 }
 0x5f8   : > { %v1040_v50 = vmul.f32 %v2245_v49, %v2245_v49 }
 0x5fa   : > { %v1050_v52 = vsel %vm914_vm1, %v1040_v50, 0.0 }
 0x5fb   : > { %1051 = vadd.xlane.f32.xlu0 %v1050_v52 }
 0x60d   : > { %1048 = vadd.xlane.f32.xlu1 %v1047_v53 }
 0x612   : > { %v1062_v54 = vpop.permute.xlu1 %1061 }
 0x613   : > { %v1073_v55 = vsel %vm914_vm1, %v1062_v54, 0.0 }
 0x614   : > { %1074 = vadd.xlane.f32.xlu0 %v1073_v55 }
 0x616   : > { %v1090_v56 = vpop.permute.xlu1 %1089 }
 0x617   : > { %v1101_v57 = vsel %vm914_vm1, %v1090_v56, 0.0 }
 0x618   : > { %1102 = vadd.xlane.f32.xlu0 %v1101_v57 }
 0x61a   : > { %v1118_v58 = vpop.permute.xlu1 %1117 }
 0x61b   : > { %v1129_v23 = vsel %vm914_vm1, %v1118_v58, 0.0 }
 0x61c   : > { %1130 = vadd.xlane.f32.xlu0 %v1129_v23 }
 0x61e   : > { %1067 = vrot.lane.b32.xlu1 %v1040_v50, %s1774_s28 }
 0x622   : > { %1095 = vrot.lane.b32.xlu1 %v1040_v50, %s1773_s12 }
 0x626   : > { %1123 = vrot.lane.b32.xlu1 %v1040_v50, %s1775_s15 }
 0x62b   : > { %v1064_v34 = vpop.permute.xlu0 %1063 }
 0x62c   : > { %v1076_v40 = vsel %vm914_vm1, %v1064_v34, 0.0 }
 0x62f   : > { %v1092_v59 = vpop.permute.xlu0 %1091 }
 0x630   : > { %v1104_v18 = vsel %vm914_vm1, %v1092_v59, 0.0 }
 0x64a   : > { %1077 = vadd.xlane.f32.xlu1 %v1076_v40 }
 0x64e   : > { %1105 = vadd.xlane.f32.xlu1 %v1104_v18 }
 0x659   : > { %v1043_v60 = vpop.xlane.xlu1 %1042 }
 0x65a   : > { %v1053_v13 = vmul.f32 0.03125, %v1043_v60 }
 0x65c   : > { %v1145_v20 = vadd.f32 1e-05, %v1053_v13 }
 0x65d   : > { %v1120_v61 = vpop.permute.xlu1 %1119 }
 0x65e   : > { %v1132_v22 = vsel %vm914_vm1, %v1120_v61, 0.0  ;;  %1575 = vrsqrt.f32 %v1145_v20 }
 0x65f   : > { %1133 = vadd.xlane.f32.xlu0 %v1132_v22 }
 0x661   : > { %v1066_v62 = vpop.permute.xlu1 %1065 }
 0x662   : > { %v1079_v42 = vsel %vm914_vm1, %v1066_v62, 0.0 }
 0x663   : > { %1080 = vadd.xlane.f32.xlu0 %v1079_v42 }
 0x665   : > { %v1094_v41 = vpop.permute.xlu1 %1093 }
 0x666   : > { %v1107_v63 = vsel %vm914_vm1, %v1094_v41, 0.0 }
 0x667   : > { %1108 = vadd.xlane.f32.xlu0 %v1107_v63 }
 0x668   : > { %v1576_v44 = vpop.eup %1575 }
 0x669   : > { %v1122_v0 = vpop.permute.xlu1 %1121  ;;  %v1046_v9 = vpop.xlane.xlu0 %1045 }
 0x66a   : > { %v1135_v1 = vsel %vm914_vm1, %v1122_v0, 0.0  ;;  %v1054_v15 = vmul.f32 0.03125, %v1046_v9 }
 0x66b   : > { %1136 = vadd.xlane.f32.xlu0 %v1135_v1 }
 0x66c   : > { %v1146_v27 = vadd.f32 1e-05, %v1054_v15 }
 0x688   : > { %v2268_v36 = vpop.xlane.xlu0 %1051 }
 0x69a   : > { %v2263_v2 = vpop.xlane.xlu1 %1048 }
 0x69b   : > { %v1055_v61 = vmul.f32 0.03125, %v2263_v2 }
 0x69d   : > { %v1147_v41 = vadd.f32 1e-05, %v1055_v61 }
 0x69e   : > { %v1068_v3 = vpop.permute.xlu1 %1067 }
 0x69f   : > { %v1082_v4 = vsel %vm914_vm1, %v1068_v3, 0.0  ;;  %v1056_v3 = vmul.f32 0.03125, %v2268_v36 }
 0x6a0   : > { %1083 = vadd.xlane.f32.xlu0 %v1082_v4 }
 0x6a1   : > { %v1075_v10 = vpop.xlane.xlu0 %1074 }
 0x6a2   : > { %v1096_v6 = vpop.permute.xlu1 %1095  ;;  %v1085_v39 = vmul.f32 0.03125, %v1075_v10 }
 0x6a3   : > { %v1110_v46 = vsel %vm914_vm1, %v1096_v6, 0.0 }
 0x6a4   : > { %1111 = vadd.xlane.f32.xlu0 %v1110_v46  ;;  %v1153_v21 = vadd.f32 1e-05, %v1085_v39 }
 0x6a5   : > { %v1103_v11 = vpop.xlane.xlu0 %1102 }
 0x6a6   : > { %v1124_v7 = vpop.permute.xlu1 %1123  ;;  %v1113_v16 = vmul.f32 0.03125, %v1103_v11  ;;  %1577 = vrsqrt.f32 %v1153_v21 }
 0x6a7   : > { %v1138_v8 = vsel %vm914_vm1, %v1124_v7, 0.0 }
 0x6a8   : > { %1139 = vadd.xlane.f32.xlu0 %v1138_v8  ;;  %v1161_v25 = vadd.f32 1e-05, %v1113_v16  ;;  %v1148_v8 = vadd.f32 1e-05, %v1056_v3 }
 0x6a9   : > { %v1131_v51 = vpop.xlane.xlu0 %1130 }
 0x6aa   : > { %v1141_v17 = vmul.f32 0.03125, %v1131_v51  ;;  %1579 = vrsqrt.f32 %v1161_v25 }
 0x6ac   : > { %v1169_v30 = vadd.f32 1e-05, %v1141_v17 }
 0x6ae   : > { %1581 = vrsqrt.f32 %v1169_v30 }
 0x6b0   : > { %v1578_v45 = vpop.eup %1577 }
 0x6b1   : > { %v1177_v47 = vsel %vm914_vm1, %v1576_v44, %v1578_v45 }
 0x6b4   : > { %v1580_v32 = vpop.eup %1579 }
 0x6b5   : > { %v1181_v33 = vsel %vm452_vm0, %v1177_v47, %v1580_v32 }
 0x6b8   : > { %v1582_v26 = vpop.eup %1581 }
 0x6b9   : > { %v1185_v52 = vsel %vm1028_vm2, %v1181_v33, %v1582_v26 }
 0x6ba   : > { %v1189_v57 = vmul.f32 %v1185_v52, %v2210_v5 }
 0x6bc   : > { %v1193_v34 = vmax.f32 %v1189_v57, 0.0 }
 0x6d7   : > { %v1078_v12 = vpop.xlane.xlu1 %1077 }
 0x6d8   : > { %v1086_v24 = vmul.f32 0.03125, %v1078_v12 }
 0x6da   : > { %v1154_v31 = vadd.f32 1e-05, %v1086_v24 }
 0x6db   : > { %v1106_v19 = vpop.xlane.xlu1 %1105 }
 0x6dc   : > { %v1114_v28 = vmul.f32 0.03125, %v1106_v19  ;;  %1583 = vrsqrt.f32 %v1154_v31 }
 0x6de   : > { %v1162_v29 = vadd.f32 1e-05, %v1114_v28 }
 0x6e0   : > { %1585 = vrsqrt.f32 %v1162_v29 }
 0x6e1   : > { %1587 = vrsqrt.f32 %v1146_v27 }
 0x6e6   : > { %v1584_v48 = vpop.eup %1583 }
 0x6ea   : > { %v1586_v50 = vpop.eup %1585 }
 0x6eb   : > { %v1588_v53 = vpop.eup %1587 }
 0x6ec   : > { %v1134_v37 = vpop.xlane.xlu0 %1133  ;;  %v1178_v54 = vsel %vm914_vm1, %v1588_v53, %v1584_v48 }
 0x6ed   : > { %v1142_v38 = vmul.f32 0.03125, %v1134_v37  ;;  %v1182_v56 = vsel %vm452_vm0, %v1178_v54, %v1586_v50 }
 0x6ef   : > { %v1170_v43 = vadd.f32 1e-05, %v1142_v38 }
 0x6f0   : > { %v1081_v18 = vpop.xlane.xlu0 %1080 }
 0x6f1   : > { %1589 = vrsqrt.f32 %v1170_v43  ;;  %v1087_v62 = vmul.f32 0.03125, %v1081_v18 }
 0x6f2   : > { %1591 = vrsqrt.f32 %v1147_v41 }
 0x6f3   : > { %v1155_v0 = vadd.f32 1e-05, %v1087_v62 }
 0x6f4   : > { %v1109_v60 = vpop.xlane.xlu0 %1108 }
 0x6f5   : > { %v1115_v42 = vmul.f32 0.03125, %v1109_v60  ;;  %1593 = vrsqrt.f32 %v1155_v0 }
 0x6f7   : > { %v1163_v1 = vadd.f32 1e-05, %v1115_v42 }
 0x6f8   : > { %v1137_v22 = vpop.xlane.xlu0 %1136 }
 0x6f9   : > { %v1143_v5 = vmul.f32 0.03125, %v1137_v22  ;;  %1595 = vrsqrt.f32 %v1163_v1 }
 0x6fb   : > { %v1590_v55 = vpop.eup %1589  ;;  %v1171_v4 = vadd.f32 1e-05, %v1143_v5 }
 0x6fc   : > { %v1186_v58 = vsel %vm1028_vm2, %v1182_v56, %v1590_v55  ;;  %v1592_v12 = vpop.eup %1591 }
 0x6fd   : > { %v1190_v23 = vmul.f32 %v1186_v58, %v2221_v14  ;;  %1597 = vrsqrt.f32 %v1171_v4 }
 0x6ff   : > { %v1194_v40 = vmax.f32 %v1190_v23, 0.0  ;;  %v1594_v36 = vpop.eup %1593 }
 0x700   : > { %v1179_v39 = vsel %vm914_vm1, %v1592_v12, %v1594_v36 }
 0x701   : > { %v1389_v59 = vpack.c.bf16 %v1194_v40, %v1193_v34 }
 0x703   : > { %1390 = vst [vmem:[%s2280_s9] sm:$0xff] %v1389_v59   ;;  %v1596_v13 = vpop.eup %1595 }
 0x704   : > { %v1183_v17 = vsel %vm452_vm0, %v1179_v39, %v1596_v13 }
 0x707   : > { %v1598_v51 = vpop.eup %1597 }
 0x708   : > { %v1187_v20 = vsel %vm1028_vm2, %v1183_v17, %v1598_v51 }
 0x709   : > { %v1191_v15 = vmul.f32 %v1187_v20, %v2233_v35 }
 0x70b   : > { %v1195_v29 = vmax.f32 %v1191_v15, 0.0 }
 0x72d   : > { %v1084_v63 = vpop.xlane.xlu0 %1083 }
 0x72e   : > { %v1088_v14 = vmul.f32 0.03125, %v1084_v63 }
 0x730   : > { %v1156_v46 = vadd.f32 1e-05, %v1088_v14 }
 0x731   : > { %v1112_v6 = vpop.xlane.xlu0 %1111 }
 0x732   : > { %v1116_v7 = vmul.f32 0.03125, %v1112_v6  ;;  %1599 = vrsqrt.f32 %v1156_v46 }
 0x734   : > { %v1164_v2 = vadd.f32 1e-05, %v1116_v7 }
 0x735   : > { %v1140_v9 = vpop.xlane.xlu0 %1139 }
 0x736   : > { %v1144_v10 = vmul.f32 0.03125, %v1140_v9  ;;  %1601 = vrsqrt.f32 %v1164_v2 }
 0x737   : > { %1603 = vrsqrt.f32 %v1148_v8 }
 0x738   : > { %v1172_v11 = vadd.f32 1e-05, %v1144_v10 }
 0x73a   : > { %1605 = vrsqrt.f32 %v1172_v11 }
 0x73c   : > { %v1600_v16 = vpop.eup %1599 }
 0x740   : > { %v1602_v19 = vpop.eup %1601 }
 0x741   : > { %v1604_v21 = vpop.eup %1603 }
 0x742   : > { %v1180_v24 = vsel %vm914_vm1, %v1604_v21, %v1600_v16 }
 0x743   : > { %v1184_v28 = vsel %vm452_vm0, %v1180_v24, %v1602_v19 }
 0x744   : > { %v1606_v25 = vpop.eup %1605 }
 0x745   : > { %v1188_v30 = vsel %vm1028_vm2, %v1184_v28, %v1606_v25 }
 0x746   : > { %v1192_v31 = vmul.f32 %v1188_v30, %v2245_v49 }
 0x748   : > { %v1196_v27 = vmax.f32 %v1192_v31, 0.0 }
 0x74a   : > { %v1394_v37 = vpack.c.bf16 %v1196_v27, %v1195_v29 }
 0x74c   : > { %1396 = vst [vmem:[%s2280_s9 + $0x8] sm:$0xff] %v1394_v37  }
 0x74d   : > { %1706 = shalt.err (!%p1703_p2)
}
 0x74e   : > { %s1707_s13 = scalar_lea.hbm %s2298_s6, 256  ;;  %s1711_s15 = scalar_lea.hbm %s2352_s5, 512 }
 0x74f   : > { %p1708_p13 = scmp.ne.s32.totalorder %s2298_s6, %s1707_s13  ;;  %p1712_p4 = scmp.lt.u32.totalorder %s2298_s6, %s2352_s5 }
 0x750   : > { %p1713_p7 = scmp.lt.u32.totalorder %s1711_s15, %s1707_s13  ;;  %p1715_p11 = scmp.lt.u32.totalorder %s1707_s13, %s2298_s6 }
 0x751   : > { %p1709_p6 = pnand %p1708_p13, %p2366_p0 }
 0x752   : > { %p1714_p8 = por %p1713_p7, %p1712_p4 }
 0x753   : > { %p1710_p10 = pneg %p1709_p6 }
 0x754   : > { %p1716_p1 = por %p1715_p11, %p1714_p8 }
 0x756   : > { %p1717_p3 = pnand %p1716_p1, %p1710_p10 }
 0x758   : > { %1720 = shalt.err (!%p1717_p3)
}
 0x759   : > { %s1777_s23 = smov 4  }
 0x75a   : > { %1435 = dma.vmem_to_hbm [thread:$0]  (%p2366_p0), %s2300_s11, 256, %s2298_s6, %s1218_s8, %s1773_s12, %s1773_s12, %s1777_s23  }
 0x75b PF: > { %s1246_s7 = sand.u32 1, %s1751_s18   ;;  %p2367_p5 = scmp.ne.s32.totalorder %s2357_s25, 0 }
 0x75c   : > { %p2368_p9 = scmp.ge.s32.totalorder %s1763_s21, 2  ;;  %s1247_s14 = scalar_lea.sflag [#allocation4], %s1246_s7 }
 0x75e   : > { %p1449_p12 = pnand %p2368_p9, %p2367_p5 }
 0x760   : > { %1746 = dma.done.wait (!%p1449_p12), %s1247_s14, 256  }
 0x761   : > { %1748 = vsyncadd (!%p1449_p12), %s1247_s14, 4294967040  ;;  %p19_p2 = scmp.ge.s32.totalorder %s1921_s16, 4   ;;  %s2369_s18 = smov %s1755_s19 }
 0x762   : > { %s2370_s19 = smov %s1759_s20  ;;  %s2371_s20 = smov %s1930_s27 }
 0x763   : > { %s2372_s21 = smov %s1921_s16  ;;  %21 = sbr.rel (!%p19_p2) target bundleno = 6 (0x6), region = 93 }
 0x76a   :  { %1252 = vsyncpa [#allocation3], 1 }
 0x76b   :  { %1254 = vsyncpa [#allocation3 + $0x1], 1 }
 0x76c   :  { %1255 = vsyncpa [#allocation6], 1 }
 0x76d   :  { %1256 = vsyncpa [#allocation4], 1 }
 0x76e   :  { %1258 = vsyncpa [#allocation4 + $0x1], 1 }

</bundles_post_ra>
